<compile_context>
chip_gen: v7x
topology: tpu7x:2x2x1
jax: 0.10.0
libtpu: 0.0.40
codegen_flags: <defaults>
</compile_context>

<pallas_src>
import functools

import numpy as np
import jax
import jax.numpy as jnp
from jax.experimental import pallas as pl
from jax.experimental.pallas import tpu as pltpu

BN_EPS = 1e-5


# ------------------------------ in-kernel conv ------------------------------ #

def _conv3x3_flat(az, w_ref, b_ref, Wd, Q, m_left, m_right):
    """3x3 'same' conv, channel-major, on a zero-extended flat activation.

    az      : (C_in, P) bf16.  Per image: [W+1 zeros | H*W data | W+1 zeros];
              consecutive images are separated by 2W+2 zero columns.
    w_ref   : (9, C_out, C_in) bf16 ref (BN scale folded in), tap t = kh*3+kw.
    b_ref   : (C_out, 1) f32 ref (folded BN bias).
    Output column q corresponds to flat spatial position q of its image
    (image n occupies columns [n*S, n*S + H*W), S = H*W + 2W + 2).
    Returns (C_out, Q) f32.
    """
    acc = None
    for kh in range(3):
        for kw in range(3):
            t = kh * 3 + kw
            off = (kh - 1) * Wd + (kw - 1)
            patch = jax.lax.slice_in_dim(az, Wd + 1 + off, Wd + 1 + off + Q,
                                         axis=1)                  # (Cin, Q) bf16
            if kw == 0:                    # dw = -1: kill wo==0 wrap-around
                patch = patch * m_left
            elif kw == 2:                  # dw = +1: kill wo==W-1 wrap-around
                patch = patch * m_right
            c = jnp.dot(w_ref[t], patch, preferred_element_type=jnp.float32)
            acc = c if acc is None else acc + c
    return acc + b_ref[...]


# ------------------------------ fused kernel -------------------------------- #

def _basic_block_kernel(*refs, H, W, Cin, C1, C2, stride, downsample, nb):
    if downsample:
        (x_ref, w1_ref, b1_ref, w2_ref, b2_ref,
         m1_ref, m2_ref, d_ref, o_ref) = refs
    else:
        (x_ref, w1_ref, b1_ref, w2_ref, b2_ref,
         m1_ref, m2_ref, o_ref) = refs

    Ho, Wo = H // stride, W // stride
    M1, M2 = H * W, Ho * Wo
    S1 = M1 + 2 * W + 2
    S2 = M2 + 2 * Wo + 2
    Q1 = nb * S1 - 2 * W - 2               # conv1 output columns (full res)
    Q2 = nb * S2 - 2 * Wo - 2              # conv2 output columns

    # Hoisted small loads (masks / biases / weights are read once per step).
    m1l, m1r = m1_ref[0:1, :], m1_ref[1:2, :]
    m2l, m2r = m2_ref[0:1, :], m2_ref[1:2, :]

    # Zero-extended flat input (Cin, nb*S1), single f32->bf16 cast, no transpose.
    zpad1 = jnp.zeros((Cin, W + 1), jnp.bfloat16)
    pieces = []
    for n in range(nb):
        pieces += [zpad1, x_ref[n].astype(jnp.bfloat16), zpad1]
    xz = jnp.concatenate(pieces, axis=1)

    # ---- conv1 + BN1 + ReLU (computed at full input resolution) -------------
    h1 = _conv3x3_flat(xz, w1_ref, b1_ref, W, Q1, m1l, m1r)       # (C1, Q1) f32
    h1 = jnp.maximum(h1, 0.0).astype(jnp.bfloat16)

    # x sampled at conv1-output columns (= the off-0 "patch"): shortcut source.
    x0 = jax.lax.slice_in_dim(xz, W + 1, W + 1 + Q1, axis=1)      # (Cin, Q1) bf16

    if downsample:
        # Stride-2: decimate conv1's output AND the shortcut with ONE 0/1
        # selection matmul straight into conv2's zero-extended layout
        # (all halo / inter-image gap columns come out zero for free).
        both = jnp.concatenate([h1, x0], axis=0)                  # (C1+Cin, Q1)
        both_d = jnp.dot(both, d_ref[...],
                         preferred_element_type=jnp.float32)      # (C1+Cin, nb*S2)
        h1z = both_d[:C1, :].astype(jnp.bfloat16)                 # conv2 input
        sc = both_d[C1:, Wo + 1:Wo + 1 + Q2]                      # (Cin, Q2) f32
        pad_lo = C2 // 4
        pad_hi = C2 - Cin - pad_lo
        sc = jnp.concatenate(                                      # option-A channel pad
            [jnp.zeros((pad_lo, Q2), jnp.float32), sc,
             jnp.zeros((pad_hi, Q2), jnp.float32)], axis=0)       # (C2, Q2)
    else:
        if nb > 1:
            h1 = h1 * m1_ref[2:3, :]       # zero the inter-image gap columns
        zpad2 = jnp.zeros((C1, Wo + 1), jnp.bfloat16)
        h1z = jnp.concatenate([zpad2, h1, zpad2], axis=1)          # (C1, nb*S2)
        sc = x0                                                    # identity residual

    # ---- conv2 + BN2, residual add, final ReLU ------------------------------
    out = _conv3x3_flat(h1z, w2_ref, b2_ref, Wo, Q2, m2l, m2r)     # (C2, Q2) f32
    out = jnp.maximum(out + sc, 0.0).astype(o_ref.dtype)

    # Lane-dense stores of each image's (C2, Ho*Wo) slab (already channel-major).
    for n in range(nb):
        o_ref[n] = jax.lax.slice_in_dim(out, n * S2, n * S2 + M2, axis=1)


# --------------------------------- wrapper ---------------------------------- #

def _fold_bn(w_oihw, gamma, beta, mean, var):
    """Conv (O,I,3,3) + inference BN -> (9, O, I) bf16 taps + (O,1) f32 bias."""
    inv = gamma * jax.lax.rsqrt(var + BN_EPS)                      # (O,)
    w = jnp.transpose(w_oihw, (2, 3, 0, 1))                        # (3,3,O,I)
    w = w.reshape(9, w.shape[2], w.shape[3]) * inv[None, :, None]
    b = (beta - mean * inv).reshape(-1, 1)
    return w.astype(jnp.bfloat16), b.astype(jnp.float32)


def _edge_masks(nb, Wd, Md):
    """(3, Q) bf16: rows = [dw=-1 valid, dw=+1 valid, is-data-column]."""
    S = Md + 2 * Wd + 2
    Q = nb * S - 2 * Wd - 2
    q = np.arange(Q)
    r = q % S
    is_data = r < Md
    wo = r % Wd
    left = np.where(is_data & (wo == 0), 0.0, 1.0)
    right = np.where(is_data & (wo == Wd - 1), 0.0, 1.0)
    data = is_data.astype(np.float64)
    return jnp.asarray(np.stack([left, right, data]), jnp.bfloat16)


def _decimation_matrix(nb, H, W):
    """0/1 matrix mapping full-res conv1 output columns -> conv2's
    zero-extended flat input layout at the ::2,::2 subsampled positions."""
    Ho, Wo = H // 2, W // 2
    M1, M2 = H * W, Ho * Wo
    S1, S2 = M1 + 2 * W + 2, M2 + 2 * Wo + 2
    Q1, P2 = nb * S1 - 2 * W - 2, nb * S2
    D = np.zeros((Q1, P2), np.float32)
    for n in range(nb):
        for ho in range(Ho):
            for wo in range(Wo):
                D[n * S1 + 2 * ho * W + 2 * wo,
                  n * S2 + Wo + 1 + ho * Wo + wo] = 1.0
    return jnp.asarray(D, jnp.bfloat16)


def basic_block(x_nchw, params, *, stride=1, option="A", nb=1):
    """Fused BasicBlock forward.  x: (N, Cin, H, W) f32 NCHW.  Returns bf16."""
    assert option == "A"                   # TODO(synk): option-B shortcut not implemented
    N, Cin, H, W = x_nchw.shape
    C1 = params["conv1_w"].shape[0]
    C2 = params["conv2_w"].shape[0]
    assert C1 == C2 and N % nb == 0
    downsample = (stride != 1) or (Cin != C2)
    if downsample:
        assert stride == 2 and H % 2 == 0 and W % 2 == 0
        assert Cin + 2 * (C2 // 4) == C2, "option-A channel pad mismatch"
    else:
        assert stride == 1

    Ho, Wo = H // stride, W // stride
    M1, M2 = H * W, Ho * Wo
    S2 = M2 + 2 * Wo + 2
    Q1 = nb * (M1 + 2 * W + 2) - 2 * W - 2
    Q2 = nb * S2 - 2 * Wo - 2

    w1, b1 = _fold_bn(params["conv1_w"], params["bn1_gamma"], params["bn1_beta"],
                      params["bn1_mean"], params["bn1_var"])
    w2, b2 = _fold_bn(params["conv2_w"], params["bn2_gamma"], params["bn2_beta"],
                      params["bn2_mean"], params["bn2_var"])
    m1 = _edge_masks(nb, W, M1)
    m2 = _edge_masks(nb, Wo, M2)

    x_flat = x_nchw.reshape(N, Cin, M1)    # free reshape; kept f32, cast in-kernel

    inputs = [x_flat, w1, b1, w2, b2, m1, m2]
    in_specs = [
        pl.BlockSpec((nb, Cin, M1), lambda i: (i, 0, 0)),
        pl.BlockSpec((9, C1, Cin), lambda i: (0, 0, 0)),
        pl.BlockSpec((C1, 1), lambda i: (0, 0)),
        pl.BlockSpec((9, C2, C1), lambda i: (0, 0, 0)),
        pl.BlockSpec((C2, 1), lambda i: (0, 0)),
        pl.BlockSpec((3, Q1), lambda i: (0, 0)),
        pl.BlockSpec((3, Q2), lambda i: (0, 0)),
    ]
    if downsample:
        inputs.append(_decimation_matrix(nb, H, W))
        in_specs.append(pl.BlockSpec((Q1, nb * S2), lambda i: (0, 0)))

    kernel = functools.partial(
        _basic_block_kernel, H=H, W=W, Cin=Cin, C1=C1, C2=C2,
        stride=stride, downsample=downsample, nb=nb)

    out = pl.pallas_call(
        kernel,
        out_shape=jax.ShapeDtypeStruct((N, C2, M2), jnp.bfloat16),
        grid=(N // nb,),
        in_specs=in_specs,
        out_specs=pl.BlockSpec((nb, C2, M2), lambda i: (i, 0, 0)),
        compiler_params=pltpu.CompilerParams(
            dimension_semantics=("parallel",)),
    )(*inputs)

    return out.reshape(N, C2, Ho, Wo)      # free reshape, already NCHW


# ----------------------------- pure-JAX reference --------------------------- #

def ref_basic_block(x, params, *, stride=1):
    def conv(a, w, s):
        return jax.lax.conv_general_dilated(
            a, w, (s, s), ((1, 1), (1, 1)),
            dimension_numbers=("NCHW", "OIHW", "NCHW"),
            precision=jax.lax.Precision.HIGHEST)

    def bn(a, g, b, m, v):
        rs = lambda t: t.reshape(1, -1, 1, 1)
        return (a - rs(m)) / jnp.sqrt(rs(v) + BN_EPS) * rs(g) + rs(b)

    in_planes = x.shape[1]
    planes = params["conv1_w"].shape[0]
    out = jax.nn.relu(bn(conv(x, params["conv1_w"], stride),
                         params["bn1_gamma"], params["bn1_beta"],
                         params["bn1_mean"], params["bn1_var"]))
    out = bn(conv(out, params["conv2_w"], 1),
             params["bn2_gamma"], params["bn2_beta"],
             params["bn2_mean"], params["bn2_var"])
    if stride != 1 or in_planes != planes:
        pad = planes // 4
        sc = jnp.pad(x[:, :, ::2, ::2], ((0, 0), (pad, pad), (0, 0), (0, 0)))
    else:
        sc = x
    return jax.nn.relu(out + sc)


# -------------------------------- parameters -------------------------------- #

def init_params(key, in_planes, planes):
    ks = jax.random.split(key, 10)
    return {
        "conv1_w": 0.1 * jax.random.normal(ks[0], (planes, in_planes, 3, 3), jnp.float32),
        "bn1_gamma": 1.0 + 0.1 * jax.random.normal(ks[1], (planes,), jnp.float32),
        "bn1_beta": 0.1 * jax.random.normal(ks[2], (planes,), jnp.float32),
        "bn1_mean": 0.1 * jax.random.normal(ks[3], (planes,), jnp.float32),
        "bn1_var": jax.random.uniform(ks[4], (planes,), jnp.float32, 0.5, 1.5),
        "conv2_w": 0.1 * jax.random.normal(ks[5], (planes, planes, 3, 3), jnp.float32),
        "bn2_gamma": 1.0 + 0.1 * jax.random.normal(ks[6], (planes,), jnp.float32),
        "bn2_beta": 0.1 * jax.random.normal(ks[7], (planes,), jnp.float32),
        "bn2_mean": 0.1 * jax.random.normal(ks[8], (planes,), jnp.float32),
        "bn2_var": jax.random.uniform(ks[9], (planes,), jnp.float32, 0.5, 1.5),
    }


if __name__ == "__main__":
    key = jax.random.PRNGKey(0)
    kx, kp1, kp2 = jax.random.split(key, 3)
    x = jax.random.normal(kx, (2, 4, 16, 16), jnp.float32)     # NCHW

    p1 = init_params(kp1, 4, 4)        # identity shortcut (stride 1, 4 -> 4)
    p2 = init_params(kp2, 4, 8)        # option-A downsample (stride 2, 4 -> 8)

    cases = [
        (basic_block(x, p1, stride=1, nb=1), ref_basic_block(x, p1, stride=1)),
        (basic_block(x, p2, stride=2, nb=1), ref_basic_block(x, p2, stride=2)),
        (basic_block(x, p1, stride=1, nb=2), ref_basic_block(x, p1, stride=1)),
        (basic_block(x, p2, stride=2, nb=2), ref_basic_block(x, p2, stride=2)),
    ]
    jax.block_until_ready([c[0] for c in cases])

    for y, r in cases:
        assert y.shape == r.shape, (y.shape, r.shape)
        rel_err = float(jnp.max(jnp.abs(y.astype(jnp.float32) - r))
                        / (jnp.max(jnp.abs(r)) + 1e-6))
        assert rel_err < 2e-2, rel_err

    print("KERNEL_OK")
</pallas_src>

<mosaic_0001>
module attributes {stable_mosaic.version = 11 : i64} {
  func.func @_basic_block_kernel(%arg0: i32, %arg1: memref<1x4x256xf32, #tpu.memory_space<vmem>>, %arg2: memref<9x4x4xbf16, #tpu.memory_space<vmem>>, %arg3: memref<4x1xf32, #tpu.memory_space<vmem>>, %arg4: memref<9x4x4xbf16, #tpu.memory_space<vmem>>, %arg5: memref<4x1xf32, #tpu.memory_space<vmem>>, %arg6: memref<3x256xbf16, #tpu.memory_space<vmem>>, %arg7: memref<3x256xbf16, #tpu.memory_space<vmem>>, %arg8: memref<1x4x256xbf16, #tpu.memory_space<vmem>>) attributes {dimension_semantics = [#tpu.dimension_semantics<parallel>], iteration_bounds = array<i64: 2>, scalar_prefetch = 0 : i64, scratch_operands = 0 : i64, tpu.core_type = #tpu.core_type<tc>, window_params = [{transform_indices = @transform_0, window_bounds = array<i64: 1, 4, 256>}, {pipeline_mode = #tpu.pipeline_mode<synchronous>, transform_indices = @transform_1, window_bounds = array<i64: 9, 4, 4>}, {pipeline_mode = #tpu.pipeline_mode<synchronous>, transform_indices = @transform_2, window_bounds = array<i64: 4, 1>}, {pipeline_mode = #tpu.pipeline_mode<synchronous>, transform_indices = @transform_3, window_bounds = array<i64: 9, 4, 4>}, {pipeline_mode = #tpu.pipeline_mode<synchronous>, transform_indices = @transform_4, window_bounds = array<i64: 4, 1>}, {pipeline_mode = #tpu.pipeline_mode<synchronous>, transform_indices = @transform_5, window_bounds = array<i64: 3, 256>}, {pipeline_mode = #tpu.pipeline_mode<synchronous>, transform_indices = @transform_6, window_bounds = array<i64: 3, 256>}, {transform_indices = @transform_7, window_bounds = array<i64: 1, 4, 256>}]} {
    %c0 = arith.constant 0 : index
    %c0_0 = arith.constant 0 : index
    %0 = vector.load %arg6[%c0, %c0_0] : memref<3x256xbf16, #tpu.memory_space<vmem>>, vector<1x256xbf16>
    %c1 = arith.constant 1 : index
    %c0_1 = arith.constant 0 : index
    %1 = vector.load %arg6[%c1, %c0_1] : memref<3x256xbf16, #tpu.memory_space<vmem>>, vector<1x256xbf16>
    %c0_2 = arith.constant 0 : index
    %c0_3 = arith.constant 0 : index
    %2 = vector.load %arg7[%c0_2, %c0_3] : memref<3x256xbf16, #tpu.memory_space<vmem>>, vector<1x256xbf16>
    %c1_4 = arith.constant 1 : index
    %c0_5 = arith.constant 0 : index
    %3 = vector.load %arg7[%c1_4, %c0_5] : memref<3x256xbf16, #tpu.memory_space<vmem>>, vector<1x256xbf16>
    %cst = arith.constant 0.000000e+00 : bf16
    %4 = vector.broadcast %cst : bf16 to vector<4x17xbf16>
    %c0_6 = arith.constant 0 : index
    %c0_7 = arith.constant 0 : index
    %c0_8 = arith.constant 0 : index
    %5 = vector.load %arg1[%c0_6, %c0_7, %c0_8] : memref<1x4x256xf32, #tpu.memory_space<vmem>>, vector<1x4x256xf32>
    %6 = vector.shape_cast %5 : vector<1x4x256xf32> to vector<4x256xf32>
    %7 = arith.truncf %6 : vector<4x256xf32> to vector<4x256xbf16>
    %8 = tpu.concatenate %4, %7, %4 in 1 : vector<4x17xbf16>, vector<4x256xbf16>, vector<4x17xbf16> -> vector<4x290xbf16>
    %9 = vector.extract_strided_slice %8 {offsets = [0, 0], sizes = [4, 256], strides = [1, 1]} : vector<4x290xbf16> to vector<4x256xbf16>
    %10 = vector.broadcast %0 : vector<1x256xbf16> to vector<4x256xbf16>
    %11 = arith.mulf %9, %10 : vector<4x256xbf16>
    %c0_9 = arith.constant 0 : index
    %c0_10 = arith.constant 0 : index
    %c0_11 = arith.constant 0 : index
    %12 = vector.load %arg2[%c0_9, %c0_10, %c0_11] : memref<9x4x4xbf16, #tpu.memory_space<vmem>>, vector<1x4x4xbf16>
    %13 = vector.shape_cast %12 : vector<1x4x4xbf16> to vector<4x4xbf16>
    %cst_12 = arith.constant dense<0.000000e+00> : vector<4x256xf32>
    %14 = tpu.matmul %13, %11, %cst_12 {dimension_numbers = #tpu.dot_dimension_numbers<[1], [0], [0], [1], [0, 0, 1, 1], [], []>} : vector<4x4xbf16>, vector<4x256xbf16>, vector<4x256xf32> -> vector<4x256xf32>
    %15 = vector.extract_strided_slice %8 {offsets = [0, 1], sizes = [4, 256], strides = [1, 1]} : vector<4x290xbf16> to vector<4x256xbf16>
    %c1_13 = arith.constant 1 : index
    %c0_14 = arith.constant 0 : index
    %c0_15 = arith.constant 0 : index
    %16 = vector.load %arg2[%c1_13, %c0_14, %c0_15] : memref<9x4x4xbf16, #tpu.memory_space<vmem>>, vector<1x4x4xbf16>
    %17 = vector.shape_cast %16 : vector<1x4x4xbf16> to vector<4x4xbf16>
    %cst_16 = arith.constant dense<0.000000e+00> : vector<4x256xf32>
    %18 = tpu.matmul %17, %15, %cst_16 {dimension_numbers = #tpu.dot_dimension_numbers<[1], [0], [0], [1], [0, 0, 1, 1], [], []>} : vector<4x4xbf16>, vector<4x256xbf16>, vector<4x256xf32> -> vector<4x256xf32>
    %19 = arith.addf %14, %18 : vector<4x256xf32>
    %20 = vector.extract_strided_slice %8 {offsets = [0, 2], sizes = [4, 256], strides = [1, 1]} : vector<4x290xbf16> to vector<4x256xbf16>
    %21 = vector.broadcast %1 : vector<1x256xbf16> to vector<4x256xbf16>
    %22 = arith.mulf %20, %21 : vector<4x256xbf16>
    %c2 = arith.constant 2 : index
    %c0_17 = arith.constant 0 : index
    %c0_18 = arith.constant 0 : index
    %23 = vector.load %arg2[%c2, %c0_17, %c0_18] : memref<9x4x4xbf16, #tpu.memory_space<vmem>>, vector<1x4x4xbf16>
    %24 = vector.shape_cast %23 : vector<1x4x4xbf16> to vector<4x4xbf16>
    %cst_19 = arith.constant dense<0.000000e+00> : vector<4x256xf32>
    %25 = tpu.matmul %24, %22, %cst_19 {dimension_numbers = #tpu.dot_dimension_numbers<[1], [0], [0], [1], [0, 0, 1, 1], [], []>} : vector<4x4xbf16>, vector<4x256xbf16>, vector<4x256xf32> -> vector<4x256xf32>
    %26 = arith.addf %19, %25 : vector<4x256xf32>
    %27 = vector.extract_strided_slice %8 {offsets = [0, 16], sizes = [4, 256], strides = [1, 1]} : vector<4x290xbf16> to vector<4x256xbf16>
    %28 = vector.broadcast %0 : vector<1x256xbf16> to vector<4x256xbf16>
    %29 = arith.mulf %27, %28 : vector<4x256xbf16>
    %c3 = arith.constant 3 : index
    %c0_20 = arith.constant 0 : index
    %c0_21 = arith.constant 0 : index
    %30 = vector.load %arg2[%c3, %c0_20, %c0_21] : memref<9x4x4xbf16, #tpu.memory_space<vmem>>, vector<1x4x4xbf16>
    %31 = vector.shape_cast %30 : vector<1x4x4xbf16> to vector<4x4xbf16>
    %cst_22 = arith.constant dense<0.000000e+00> : vector<4x256xf32>
    %32 = tpu.matmul %31, %29, %cst_22 {dimension_numbers = #tpu.dot_dimension_numbers<[1], [0], [0], [1], [0, 0, 1, 1], [], []>} : vector<4x4xbf16>, vector<4x256xbf16>, vector<4x256xf32> -> vector<4x256xf32>
    %33 = arith.addf %26, %32 : vector<4x256xf32>
    %34 = vector.extract_strided_slice %8 {offsets = [0, 17], sizes = [4, 256], strides = [1, 1]} : vector<4x290xbf16> to vector<4x256xbf16>
    %c4 = arith.constant 4 : index
    %c0_23 = arith.constant 0 : index
    %c0_24 = arith.constant 0 : index
    %35 = vector.load %arg2[%c4, %c0_23, %c0_24] : memref<9x4x4xbf16, #tpu.memory_space<vmem>>, vector<1x4x4xbf16>
    %36 = vector.shape_cast %35 : vector<1x4x4xbf16> to vector<4x4xbf16>
    %cst_25 = arith.constant dense<0.000000e+00> : vector<4x256xf32>
    %37 = tpu.matmul %36, %34, %cst_25 {dimension_numbers = #tpu.dot_dimension_numbers<[1], [0], [0], [1], [0, 0, 1, 1], [], []>} : vector<4x4xbf16>, vector<4x256xbf16>, vector<4x256xf32> -> vector<4x256xf32>
    %38 = arith.addf %33, %37 : vector<4x256xf32>
    %39 = vector.extract_strided_slice %8 {offsets = [0, 18], sizes = [4, 256], strides = [1, 1]} : vector<4x290xbf16> to vector<4x256xbf16>
    %40 = vector.broadcast %1 : vector<1x256xbf16> to vector<4x256xbf16>
    %41 = arith.mulf %39, %40 : vector<4x256xbf16>
    %c5 = arith.constant 5 : index
    %c0_26 = arith.constant 0 : index
    %c0_27 = arith.constant 0 : index
    %42 = vector.load %arg2[%c5, %c0_26, %c0_27] : memref<9x4x4xbf16, #tpu.memory_space<vmem>>, vector<1x4x4xbf16>
    %43 = vector.shape_cast %42 : vector<1x4x4xbf16> to vector<4x4xbf16>
    %cst_28 = arith.constant dense<0.000000e+00> : vector<4x256xf32>
    %44 = tpu.matmul %43, %41, %cst_28 {dimension_numbers = #tpu.dot_dimension_numbers<[1], [0], [0], [1], [0, 0, 1, 1], [], []>} : vector<4x4xbf16>, vector<4x256xbf16>, vector<4x256xf32> -> vector<4x256xf32>
    %45 = arith.addf %38, %44 : vector<4x256xf32>
    %46 = vector.extract_strided_slice %8 {offsets = [0, 32], sizes = [4, 256], strides = [1, 1]} : vector<4x290xbf16> to vector<4x256xbf16>
    %47 = vector.broadcast %0 : vector<1x256xbf16> to vector<4x256xbf16>
    %48 = arith.mulf %46, %47 : vector<4x256xbf16>
    %c6 = arith.constant 6 : index
    %c0_29 = arith.constant 0 : index
    %c0_30 = arith.constant 0 : index
    %49 = vector.load %arg2[%c6, %c0_29, %c0_30] : memref<9x4x4xbf16, #tpu.memory_space<vmem>>, vector<1x4x4xbf16>
    %50 = vector.shape_cast %49 : vector<1x4x4xbf16> to vector<4x4xbf16>
    %cst_31 = arith.constant dense<0.000000e+00> : vector<4x256xf32>
    %51 = tpu.matmul %50, %48, %cst_31 {dimension_numbers = #tpu.dot_dimension_numbers<[1], [0], [0], [1], [0, 0, 1, 1], [], []>} : vector<4x4xbf16>, vector<4x256xbf16>, vector<4x256xf32> -> vector<4x256xf32>
    %52 = arith.addf %45, %51 : vector<4x256xf32>
    %53 = vector.extract_strided_slice %8 {offsets = [0, 33], sizes = [4, 256], strides = [1, 1]} : vector<4x290xbf16> to vector<4x256xbf16>
    %c7 = arith.constant 7 : index
    %c0_32 = arith.constant 0 : index
    %c0_33 = arith.constant 0 : index
    %54 = vector.load %arg2[%c7, %c0_32, %c0_33] : memref<9x4x4xbf16, #tpu.memory_space<vmem>>, vector<1x4x4xbf16>
    %55 = vector.shape_cast %54 : vector<1x4x4xbf16> to vector<4x4xbf16>
    %cst_34 = arith.constant dense<0.000000e+00> : vector<4x256xf32>
    %56 = tpu.matmul %55, %53, %cst_34 {dimension_numbers = #tpu.dot_dimension_numbers<[1], [0], [0], [1], [0, 0, 1, 1], [], []>} : vector<4x4xbf16>, vector<4x256xbf16>, vector<4x256xf32> -> vector<4x256xf32>
    %57 = arith.addf %52, %56 : vector<4x256xf32>
    %58 = vector.extract_strided_slice %8 {offsets = [0, 34], sizes = [4, 256], strides = [1, 1]} : vector<4x290xbf16> to vector<4x256xbf16>
    %59 = vector.broadcast %1 : vector<1x256xbf16> to vector<4x256xbf16>
    %60 = arith.mulf %58, %59 : vector<4x256xbf16>
    %c8 = arith.constant 8 : index
    %c0_35 = arith.constant 0 : index
    %c0_36 = arith.constant 0 : index
    %61 = vector.load %arg2[%c8, %c0_35, %c0_36] : memref<9x4x4xbf16, #tpu.memory_space<vmem>>, vector<1x4x4xbf16>
    %62 = vector.shape_cast %61 : vector<1x4x4xbf16> to vector<4x4xbf16>
    %cst_37 = arith.constant dense<0.000000e+00> : vector<4x256xf32>
    %63 = tpu.matmul %62, %60, %cst_37 {dimension_numbers = #tpu.dot_dimension_numbers<[1], [0], [0], [1], [0, 0, 1, 1], [], []>} : vector<4x4xbf16>, vector<4x256xbf16>, vector<4x256xf32> -> vector<4x256xf32>
    %64 = arith.addf %57, %63 : vector<4x256xf32>
    %c0_38 = arith.constant 0 : index
    %c0_39 = arith.constant 0 : index
    %65 = vector.load %arg3[%c0_38, %c0_39] : memref<4x1xf32, #tpu.memory_space<vmem>>, vector<4x1xf32>
    %66 = vector.broadcast %65 : vector<4x1xf32> to vector<4x256xf32>
    %67 = arith.addf %64, %66 : vector<4x256xf32>
    %cst_40 = arith.constant 0.000000e+00 : f32
    %68 = vector.broadcast %cst_40 : f32 to vector<4x256xf32>
    %69 = arith.maximumf %67, %68 : vector<4x256xf32>
    %70 = arith.truncf %69 : vector<4x256xf32> to vector<4x256xbf16>
    %71 = vector.extract_strided_slice %8 {offsets = [0, 17], sizes = [4, 256], strides = [1, 1]} : vector<4x290xbf16> to vector<4x256xbf16>
    %cst_41 = arith.constant 0.000000e+00 : bf16
    %72 = vector.broadcast %cst_41 : bf16 to vector<4x17xbf16>
    %73 = tpu.concatenate %72, %70, %72 in 1 : vector<4x17xbf16>, vector<4x256xbf16>, vector<4x17xbf16> -> vector<4x290xbf16>
    %74 = vector.extract_strided_slice %73 {offsets = [0, 0], sizes = [4, 256], strides = [1, 1]} : vector<4x290xbf16> to vector<4x256xbf16>
    %75 = vector.broadcast %2 : vector<1x256xbf16> to vector<4x256xbf16>
    %76 = arith.mulf %74, %75 : vector<4x256xbf16>
    %c0_42 = arith.constant 0 : index
    %c0_43 = arith.constant 0 : index
    %c0_44 = arith.constant 0 : index
    %77 = vector.load %arg4[%c0_42, %c0_43, %c0_44] : memref<9x4x4xbf16, #tpu.memory_space<vmem>>, vector<1x4x4xbf16>
    %78 = vector.shape_cast %77 : vector<1x4x4xbf16> to vector<4x4xbf16>
    %cst_45 = arith.constant dense<0.000000e+00> : vector<4x256xf32>
    %79 = tpu.matmul %78, %76, %cst_45 {dimension_numbers = #tpu.dot_dimension_numbers<[1], [0], [0], [1], [0, 0, 1, 1], [], []>} : vector<4x4xbf16>, vector<4x256xbf16>, vector<4x256xf32> -> vector<4x256xf32>
    %80 = vector.extract_strided_slice %73 {offsets = [0, 1], sizes = [4, 256], strides = [1, 1]} : vector<4x290xbf16> to vector<4x256xbf16>
    %c1_46 = arith.constant 1 : index
    %c0_47 = arith.constant 0 : index
    %c0_48 = arith.constant 0 : index
    %81 = vector.load %arg4[%c1_46, %c0_47, %c0_48] : memref<9x4x4xbf16, #tpu.memory_space<vmem>>, vector<1x4x4xbf16>
    %82 = vector.shape_cast %81 : vector<1x4x4xbf16> to vector<4x4xbf16>
    %cst_49 = arith.constant dense<0.000000e+00> : vector<4x256xf32>
    %83 = tpu.matmul %82, %80, %cst_49 {dimension_numbers = #tpu.dot_dimension_numbers<[1], [0], [0], [1], [0, 0, 1, 1], [], []>} : vector<4x4xbf16>, vector<4x256xbf16>, vector<4x256xf32> -> vector<4x256xf32>
    %84 = arith.addf %79, %83 : vector<4x256xf32>
    %85 = vector.extract_strided_slice %73 {offsets = [0, 2], sizes = [4, 256], strides = [1, 1]} : vector<4x290xbf16> to vector<4x256xbf16>
    %86 = vector.broadcast %3 : vector<1x256xbf16> to vector<4x256xbf16>
    %87 = arith.mulf %85, %86 : vector<4x256xbf16>
    %c2_50 = arith.constant 2 : index
    %c0_51 = arith.constant 0 : index
    %c0_52 = arith.constant 0 : index
    %88 = vector.load %arg4[%c2_50, %c0_51, %c0_52] : memref<9x4x4xbf16, #tpu.memory_space<vmem>>, vector<1x4x4xbf16>
    %89 = vector.shape_cast %88 : vector<1x4x4xbf16> to vector<4x4xbf16>
    %cst_53 = arith.constant dense<0.000000e+00> : vector<4x256xf32>
    %90 = tpu.matmul %89, %87, %cst_53 {dimension_numbers = #tpu.dot_dimension_numbers<[1], [0], [0], [1], [0, 0, 1, 1], [], []>} : vector<4x4xbf16>, vector<4x256xbf16>, vector<4x256xf32> -> vector<4x256xf32>
    %91 = arith.addf %84, %90 : vector<4x256xf32>
    %92 = vector.extract_strided_slice %73 {offsets = [0, 16], sizes = [4, 256], strides = [1, 1]} : vector<4x290xbf16> to vector<4x256xbf16>
    %93 = vector.broadcast %2 : vector<1x256xbf16> to vector<4x256xbf16>
    %94 = arith.mulf %92, %93 : vector<4x256xbf16>
    %c3_54 = arith.constant 3 : index
    %c0_55 = arith.constant 0 : index
    %c0_56 = arith.constant 0 : index
    %95 = vector.load %arg4[%c3_54, %c0_55, %c0_56] : memref<9x4x4xbf16, #tpu.memory_space<vmem>>, vector<1x4x4xbf16>
    %96 = vector.shape_cast %95 : vector<1x4x4xbf16> to vector<4x4xbf16>
    %cst_57 = arith.constant dense<0.000000e+00> : vector<4x256xf32>
    %97 = tpu.matmul %96, %94, %cst_57 {dimension_numbers = #tpu.dot_dimension_numbers<[1], [0], [0], [1], [0, 0, 1, 1], [], []>} : vector<4x4xbf16>, vector<4x256xbf16>, vector<4x256xf32> -> vector<4x256xf32>
    %98 = arith.addf %91, %97 : vector<4x256xf32>
    %99 = vector.extract_strided_slice %73 {offsets = [0, 17], sizes = [4, 256], strides = [1, 1]} : vector<4x290xbf16> to vector<4x256xbf16>
    %c4_58 = arith.constant 4 : index
    %c0_59 = arith.constant 0 : index
    %c0_60 = arith.constant 0 : index
    %100 = vector.load %arg4[%c4_58, %c0_59, %c0_60] : memref<9x4x4xbf16, #tpu.memory_space<vmem>>, vector<1x4x4xbf16>
    %101 = vector.shape_cast %100 : vector<1x4x4xbf16> to vector<4x4xbf16>
    %cst_61 = arith.constant dense<0.000000e+00> : vector<4x256xf32>
    %102 = tpu.matmul %101, %99, %cst_61 {dimension_numbers = #tpu.dot_dimension_numbers<[1], [0], [0], [1], [0, 0, 1, 1], [], []>} : vector<4x4xbf16>, vector<4x256xbf16>, vector<4x256xf32> -> vector<4x256xf32>
    %103 = arith.addf %98, %102 : vector<4x256xf32>
    %104 = vector.extract_strided_slice %73 {offsets = [0, 18], sizes = [4, 256], strides = [1, 1]} : vector<4x290xbf16> to vector<4x256xbf16>
    %105 = vector.broadcast %3 : vector<1x256xbf16> to vector<4x256xbf16>
    %106 = arith.mulf %104, %105 : vector<4x256xbf16>
    %c5_62 = arith.constant 5 : index
    %c0_63 = arith.constant 0 : index
    %c0_64 = arith.constant 0 : index
    %107 = vector.load %arg4[%c5_62, %c0_63, %c0_64] : memref<9x4x4xbf16, #tpu.memory_space<vmem>>, vector<1x4x4xbf16>
    %108 = vector.shape_cast %107 : vector<1x4x4xbf16> to vector<4x4xbf16>
    %cst_65 = arith.constant dense<0.000000e+00> : vector<4x256xf32>
    %109 = tpu.matmul %108, %106, %cst_65 {dimension_numbers = #tpu.dot_dimension_numbers<[1], [0], [0], [1], [0, 0, 1, 1], [], []>} : vector<4x4xbf16>, vector<4x256xbf16>, vector<4x256xf32> -> vector<4x256xf32>
    %110 = arith.addf %103, %109 : vector<4x256xf32>
    %111 = vector.extract_strided_slice %73 {offsets = [0, 32], sizes = [4, 256], strides = [1, 1]} : vector<4x290xbf16> to vector<4x256xbf16>
    %112 = vector.broadcast %2 : vector<1x256xbf16> to vector<4x256xbf16>
    %113 = arith.mulf %111, %112 : vector<4x256xbf16>
    %c6_66 = arith.constant 6 : index
    %c0_67 = arith.constant 0 : index
    %c0_68 = arith.constant 0 : index
    %114 = vector.load %arg4[%c6_66, %c0_67, %c0_68] : memref<9x4x4xbf16, #tpu.memory_space<vmem>>, vector<1x4x4xbf16>
    %115 = vector.shape_cast %114 : vector<1x4x4xbf16> to vector<4x4xbf16>
    %cst_69 = arith.constant dense<0.000000e+00> : vector<4x256xf32>
    %116 = tpu.matmul %115, %113, %cst_69 {dimension_numbers = #tpu.dot_dimension_numbers<[1], [0], [0], [1], [0, 0, 1, 1], [], []>} : vector<4x4xbf16>, vector<4x256xbf16>, vector<4x256xf32> -> vector<4x256xf32>
    %117 = arith.addf %110, %116 : vector<4x256xf32>
    %118 = vector.extract_strided_slice %73 {offsets = [0, 33], sizes = [4, 256], strides = [1, 1]} : vector<4x290xbf16> to vector<4x256xbf16>
    %c7_70 = arith.constant 7 : index
    %c0_71 = arith.constant 0 : index
    %c0_72 = arith.constant 0 : index
    %119 = vector.load %arg4[%c7_70, %c0_71, %c0_72] : memref<9x4x4xbf16, #tpu.memory_space<vmem>>, vector<1x4x4xbf16>
    %120 = vector.shape_cast %119 : vector<1x4x4xbf16> to vector<4x4xbf16>
    %cst_73 = arith.constant dense<0.000000e+00> : vector<4x256xf32>
    %121 = tpu.matmul %120, %118, %cst_73 {dimension_numbers = #tpu.dot_dimension_numbers<[1], [0], [0], [1], [0, 0, 1, 1], [], []>} : vector<4x4xbf16>, vector<4x256xbf16>, vector<4x256xf32> -> vector<4x256xf32>
    %122 = arith.addf %117, %121 : vector<4x256xf32>
    %123 = vector.extract_strided_slice %73 {offsets = [0, 34], sizes = [4, 256], strides = [1, 1]} : vector<4x290xbf16> to vector<4x256xbf16>
    %124 = vector.broadcast %3 : vector<1x256xbf16> to vector<4x256xbf16>
    %125 = arith.mulf %123, %124 : vector<4x256xbf16>
    %c8_74 = arith.constant 8 : index
    %c0_75 = arith.constant 0 : index
    %c0_76 = arith.constant 0 : index
    %126 = vector.load %arg4[%c8_74, %c0_75, %c0_76] : memref<9x4x4xbf16, #tpu.memory_space<vmem>>, vector<1x4x4xbf16>
    %127 = vector.shape_cast %126 : vector<1x4x4xbf16> to vector<4x4xbf16>
    %cst_77 = arith.constant dense<0.000000e+00> : vector<4x256xf32>
    %128 = tpu.matmul %127, %125, %cst_77 {dimension_numbers = #tpu.dot_dimension_numbers<[1], [0], [0], [1], [0, 0, 1, 1], [], []>} : vector<4x4xbf16>, vector<4x256xbf16>, vector<4x256xf32> -> vector<4x256xf32>
    %129 = arith.addf %122, %128 : vector<4x256xf32>
    %c0_78 = arith.constant 0 : index
    %c0_79 = arith.constant 0 : index
    %130 = vector.load %arg5[%c0_78, %c0_79] : memref<4x1xf32, #tpu.memory_space<vmem>>, vector<4x1xf32>
    %131 = vector.broadcast %130 : vector<4x1xf32> to vector<4x256xf32>
    %132 = arith.addf %129, %131 : vector<4x256xf32>
    %133 = arith.extf %71 : vector<4x256xbf16> to vector<4x256xf32>
    %134 = arith.addf %132, %133 : vector<4x256xf32>
    %cst_80 = arith.constant 0.000000e+00 : f32
    %135 = vector.broadcast %cst_80 : f32 to vector<4x256xf32>
    %136 = arith.maximumf %134, %135 : vector<4x256xf32>
    %137 = arith.truncf %136 : vector<4x256xf32> to vector<4x256xbf16>
    %138 = vector.extract_strided_slice %137 {offsets = [0, 0], sizes = [4, 256], strides = [1, 1]} : vector<4x256xbf16> to vector<4x256xbf16>
    %c0_81 = arith.constant 0 : index
    %c0_82 = arith.constant 0 : index
    %c0_83 = arith.constant 0 : index
    %139 = vector.load %arg8[%c0_81, %c0_82, %c0_83] : memref<1x4x256xbf16, #tpu.memory_space<vmem>>, vector<1x4x256xbf16>
    %140 = vector.shape_cast %139 : vector<1x4x256xbf16> to vector<4x256xbf16>
    %141 = vector.shape_cast %138 : vector<4x256xbf16> to vector<1x4x256xbf16>
    tpu.vector_store %arg8[%c0_81, %c0_82, %c0_83], %141 {strides = array<i32>} : memref<1x4x256xbf16, #tpu.memory_space<vmem>>, vector<1x4x256xbf16>,
    return
  }
  func.func @transform_0(%arg0: i32) -> (i32, i32, i32) {
    %c0_i32 = arith.constant 0 : i32
    %c0_i32_0 = arith.constant 0 : i32
    %c0_i32_1 = arith.constant 0 : i32
    return %arg0, %c0_i32, %c0_i32_0 : i32, i32, i32
  }
  func.func @transform_1(%arg0: i32) -> (i32, i32, i32) {
    %c0_i32 = arith.constant 0 : i32
    %c0_i32_0 = arith.constant 0 : i32
    %c0_i32_1 = arith.constant 0 : i32
    %c0_i32_2 = arith.constant 0 : i32
    return %c0_i32, %c0_i32_0, %c0_i32_1 : i32, i32, i32
  }
  func.func @transform_2(%arg0: i32) -> (i32, i32) {
    %c0_i32 = arith.constant 0 : i32
    %c0_i32_0 = arith.constant 0 : i32
    %c0_i32_1 = arith.constant 0 : i32
    return %c0_i32, %c0_i32_0 : i32, i32
  }
  func.func @transform_3(%arg0: i32) -> (i32, i32, i32) {
    %c0_i32 = arith.constant 0 : i32
    %c0_i32_0 = arith.constant 0 : i32
    %c0_i32_1 = arith.constant 0 : i32
    %c0_i32_2 = arith.constant 0 : i32
    return %c0_i32, %c0_i32_0, %c0_i32_1 : i32, i32, i32
  }
  func.func @transform_4(%arg0: i32) -> (i32, i32) {
    %c0_i32 = arith.constant 0 : i32
    %c0_i32_0 = arith.constant 0 : i32
    %c0_i32_1 = arith.constant 0 : i32
    return %c0_i32, %c0_i32_0 : i32, i32
  }
  func.func @transform_5(%arg0: i32) -> (i32, i32) {
    %c0_i32 = arith.constant 0 : i32
    %c0_i32_0 = arith.constant 0 : i32
    %c0_i32_1 = arith.constant 0 : i32
    return %c0_i32, %c0_i32_0 : i32, i32
  }
  func.func @transform_6(%arg0: i32) -> (i32, i32) {
    %c0_i32 = arith.constant 0 : i32
    %c0_i32_0 = arith.constant 0 : i32
    %c0_i32_1 = arith.constant 0 : i32
    return %c0_i32, %c0_i32_0 : i32, i32
  }
  func.func @transform_7(%arg0: i32) -> (i32, i32, i32) {
    %c0_i32 = arith.constant 0 : i32
    %c0_i32_0 = arith.constant 0 : i32
    %c0_i32_1 = arith.constant 0 : i32
    return %arg0, %c0_i32, %c0_i32_0 : i32, i32, i32
  }
}

</mosaic_0001>

<bundles_post_ra>
// kernel: tpu_custom_call.1
= control target key start
LH: loop header
LB: loop body
LE: loop exit
PB: predicated region body
PF: predicated region fallthrough
CT: control target
= control target key end

     0   :  { %12 = vsyncpa [#allocation3], 0  ;;  %s2448_s0 = inlined_call_operand.vmem [shape: f32[2,4,256], index: 0, kind: input, shape index: {}]   ;;  %s2449_s1 = inlined_call_operand.vmem [shape: bf16[9,4,4], index: 1, kind: input, shape index: {}]   ;;  %s2450_s2 = inlined_call_operand.vmem [shape: f32[4,1], index: 2, kind: input, shape index: {}]   ;;  %s2451_s3 = inlined_call_operand.vmem [shape: bf16[9,4,4], index: 3, kind: input, shape index: {}]   ;;  %s2452_s4 = inlined_call_operand.vmem [shape: f32[4,1], index: 4, kind: input, shape index: {}]   ;;  %s2453_s5 = inlined_call_operand.vmem [shape: bf16[3,256], index: 5, kind: input, shape index: {}]   ;;  %s2454_s6 = inlined_call_operand.vmem [shape: bf16[3,256], index: 6, kind: input, shape index: {}]   ;;  %s2455_s7 = inlined_call_operand.hbm [shape: bf16[2,4,256], index: 7, kind: output, shape index: {}]  }
   0x1   :  { %14 = vsyncpa [#allocation3 + $0x1], 0  ;;  %s2032_s24 = smov 0   ;;  %s2034_s25 = smov 0  }
   0x2   :  { %s2036_s26 = smov 0   ;;  %s2038_s27 = smov 0  }
   0x3 LB: > { %s2053_s28 = sadd.s32 4294967295, %s1974_s27   ;;  %s1781_s29 = sadd.s32 4294967294, %s1974_s27   ;;  %s1974_s27 = sphi %s2038_s27, %s2473_s27   ;;  %s1970_s26 = sphi %s2036_s26, %s2472_s26   ;;  %s1966_s25 = sphi %s2034_s25, %s2471_s25   ;;  %s1962_s24 = sphi %s2032_s24, %s2470_s24  }
   0x4   : > { %s2057_s30 = sadd.s32 1, %s1974_s27   ;;  %s179_s8 = sadd.s32 1, %s1970_s26 }
   0x5   : > { %s176_s9 = ssub.s32 %s1974_s27, %s2057_s30  ;;  %p189_p0 = scmp.ne.s32.totalorder %s1970_s26, %s1966_s25 }
   0x6   : > { %p177_p1 = scmp.eq.s32.totalorder %s176_s9, 0  ;;  %p190_p2 = scmp.eq.s32.totalorder %s2053_s28, 1 }
   0x7   : > { %p195_p3 = scmp.ne.s32.totalorder %s1966_s25, %s1962_s24  ;;  %p196_p4 = scmp.eq.s32.totalorder %s1781_s29, 1 }
   0x8   : > { %s2068_s10 = scalar_select %p177_p1, %s1970_s26, %s179_s8  }
   0x9   : > { %p2070_p5 = por %p190_p2, %p189_p0  ;;  %p2074_p6 = por %p196_p4, %p195_p3 }
   0xa   : > { %p1784_p7 = scmp.ge.s32.totalorder %s1974_s27, 1  ;;  %p240_p8 = scmp.lt.s32.totalorder %s1974_s27, 3 }
   0xc   : > { %p241_p9 = pnand %p1784_p7, %p240_p8 }
   0xd   : > { %v1788_v0 = vld.sshfl [vmem:[%s2453_s5] sm:$0x11 pattern:$0x76325410] (!%p241_p9)  ;;  %v315_v1 = vlaneseq (!%p241_p9)  ;;  %p272_p10 = scmp.lt.s32.totalorder (!%p241_p9), %s2053_s28, 1  ;;  %s1976_s20 = smov (!%p241_p9), 2  }
   0xe   : > { %244 = sbr.rel (%p241_p9) target bundleno = 1046 (0x416), region = 48  ;;  %v444_v2 = vshrl.u32 (!%p241_p9), %v1788_v0, 16  ;;  %v311_v3 = vcombine.high (!%p241_p9), %v1788_v0, %v1788_v0  ;;  %s1977_s21 = smov (!%p241_p9), 17   ;;  %v313_v16 = vpack.i.b16 (!%p241_p9), %v1788_v0, %v1788_v0  ;;  %vm292_vm0 = vcmask (!%p241_p9), 138240   ;;  %v328_v35 = vld [vmem:[%s2449_s1] sm:$0x3] (!%p241_p9) }
   0xf   : > { %v316_v4 = vshrl.u32 (!%p241_p9), %v315_v1, 7  ;;  %s1978_s22 = smov (!%p241_p9), 16   ;;  %s1979_s23 = smov (!%p241_p9), 18   ;;  %v1984_v21 = vmov (!%p241_p9), 0   ;;  %vm346_vm1 = vcmask (!%p241_p9), 1041408   ;;  %vm342_vm2 = vcmask (!%p241_p9), 31744  }
  0x10   : > { %v445_v5 = vpack.i.b16 (!%p241_p9), %v444_v2, %v444_v2  ;;  %v451_v6 = vshrl.u32 (!%p241_p9), %v311_v3, 16  ;;  %v320_v14 = vpack.i.b16 (!%p241_p9), %v311_v3, %v311_v3  ;;  %s1980_s29 = smov (!%p241_p9), 32   ;;  %s1981_s8 = smov (!%p241_p9), 34   ;;  %385 = vmatprep.mubr.bf16.mxu0 (!%p241_p9), %v1984_v21  ;;  %435 = vmatprep.mubr.bf16.mxu1 (!%p241_p9), %v1984_v21  ;;  %vm464_vm3 = vcmask (!%p241_p9), 15360   ;;  %v978_v62 = vld [vmem:[%s2450_s2] sm:$0xf] (!%p241_p9) }
  0x11   : > { %v2085_v7 = vsub.s32 (!%p241_p9), 0, %v316_v4  ;;  %s1982_s9 = smov (!%p241_p9), 111   ;;  %s1983_s13 = smov (!%p241_p9), 127   ;;  %1905 = vset.pattern.permute.xlu0 (!%p241_p9), %v1984_v21  ;;  %vm544_vm4 = vcmask (!%p241_p9), 130048   ;;  %vm685_vm5 = vcmask (!%p241_p9), 146432   ;;  %vm763_vm6 = vcmask (!%p241_p9), 261120  }
  0x12   : > { %v452_v8 = vpack.i.b16 (!%p241_p9), %v451_v6, %v451_v6  ;;  %s1986_s17 = smov (!%p241_p9), 112   ;;  %s2456_s18 = smov (!%p241_p9), 110   ;;  %vm904_vm7 = vcmask (!%p241_p9), 277504   ;;  %vm339_vm8 = vcmask (!%p241_p9), 1039360   ;;  %v1789_v6 = vld [vmem:[%s2449_s1 + $0x2] sm:$0x3] (!%p241_p9) }
  0x13   : > { %v450_v9 = vrot.slane (!%p241_p9), %v445_v5, %v2085_v7  ;;  %v325_v17 = vrot.slane (!%p241_p9), %v320_v14, %v2085_v7  ;;  %v318_v18 = vrot.slane (!%p241_p9), %v313_v16, %v2085_v7  ;;  %s2462_s14 = smov (!%p241_p9), 95   ;;  %vm483_vm9 = vcmask (!%p241_p9), 1031168  }
  0x14   : > { %v457_v13 = vrot.slane (!%p241_p9), %v452_v8, %v2085_v7  ;;  %vm626_vm10 = vcmask (!%p241_p9), 908288   ;;  %vm563_vm11 = vcmask (!%p241_p9), 916480   ;;  %vm704_vm12 = vcmask (!%p241_p9), 900096  }
  0x15   : > { %s273_s15 = scalar_select %p272_p10, %s2053_s28, 1  ;;  %460 = vrot.lane.b32.xlu1 %v450_v9, %s1976_s20  ;;  %vm782_vm13 = vcmask 785408   ;;  %vm845_vm14 = vcmask 777216   ;;  %vm923_vm15 = vcmask 769024  }
  0x17   : > { %s1849_s16 = sshll.u32 %s273_s15, 3  ;;  %s2460_s15 = smov 94  }
  0x18   : > { %s276_s19 = scalar_lea.vmem %s2448_s0, %s1849_s16  ;;  %s1985_s16 = smov 126  }
  0x19   : > { %v280_v10 = vld [vmem:[%s276_s19] sm:$0xff]  ;;  %462 = vrot.lane.b32.xlu1 %v457_v13, %s1976_s20  ;;  %s2458_s19 = smov 96  }
  0x1a   : > { %v284_v11 = vpack.c.bf16 %v280_v10, %v280_v10  ;;  %v282_v12 = vcombine.high %v280_v10, %v280_v10 }
  0x1c   : > { %288 = vrot.lane.b32.xlu0 %v284_v11, %s1977_s21  ;;  %v285_v15 = vpack.c.bf16 %v282_v12, %v282_v12 }
  0x1d   : > { %542 = vrot.lane.b32.xlu1 %v325_v17, %s1978_s22 }
  0x20   : > { %290 = vrot.lane.b32.xlu0 %v285_v15, %s1977_s21 }
  0x21   : > { %683 = vrot.lane.b32.xlu1 %v457_v13, %s1979_s23 }
  0x24   : > { %540 = vrot.lane.b32.xlu0 %v318_v18, %s1978_s22 }
  0x25   : > { %761 = vrot.lane.b32.xlu1 %v325_v17, %s1980_s29 }
  0x28   : > { %681 = vrot.lane.b32.xlu0 %v450_v9, %s1979_s23 }
  0x29   : > { %902 = vrot.lane.b32.xlu1 %v457_v13, %s1981_s8 }
  0x2c   : > { %759 = vrot.lane.b32.xlu0 %v318_v18, %s1980_s29 }
  0x30   : > { %900 = vrot.lane.b32.xlu0 %v450_v9, %s1981_s8 }
  0x87   : > { %v461_v29 = vpop.permute.xlu1 %460 }
  0x8b   : > { %v463_v37 = vpop.permute.xlu1 %462 }
  0x8c   : > { %v465_v41 = vsel %vm464_vm3, %v461_v29, %v463_v37 }
  0x8e   : > { %v289_v19 = vpop.permute.xlu0 %288 }
  0x8f   : > { %v2107_v20 = vsel %vm292_vm0, 0, %v289_v19  ;;  %v543_v42 = vpop.permute.xlu1 %542 }
  0x90   : > { %620 = vrot.lane.b32.xlu1 %v2107_v20, %s1982_s9  ;;  %333 = vrot.lane.b32.xlu0 %v2107_v20, %s1983_s13  ;;  %v326_v23 = vmul.bf16 %v318_v18, %v2107_v20  ;;  %v1672_v27 = vunpack.c.l.bf16 %v2107_v20  ;;  %v469_v32 = vmul.bf16 %v461_v29, %v2107_v20 }
  0x92   : > { %v291_v22 = vpop.permute.xlu0 %290  ;;  %v398_v31 = vsel %vm346_vm1, %v326_v23, 0 }
  0x93   : > { %v2118_v24 = vsel %vm292_vm0, %v289_v19, %v291_v22  ;;  %v2121_v25 = vsel %vm292_vm0, %v291_v22, 0  ;;  %v684_v48 = vpop.permute.xlu1 %683  ;;  %v1794_v22 = vld [vmem:[%s2449_s1 + $0x4] sm:$0x3] }
  0x94   : > { %337 = vrot.lane.b32.xlu0 %v2121_v25, %s1983_s13  ;;  %335 = vrot.lane.b32.xlu1 %v2118_v24, %s1983_s13  ;;  %v327_v26 = vmul.bf16 %v325_v17, %v2118_v24  ;;  %v1673_v28 = vunpack.c.l.bf16 %v2118_v24  ;;  %v470_v43 = vmul.bf16 %v465_v41, %v2118_v24  ;;  %v471_v44 = vmul.bf16 %v463_v37, %v2121_v25 }
  0x95   : > { %v551_v46 = vmul.bf16 %v543_v42, %v2121_v25  ;;  %v692_v51 = vmul.bf16 %v684_v48, %v2121_v25 }
  0x96   : > { %1792 = vmatprep.subr.msk.bf16.mxu1 %vm346_vm1, %v327_v26  ;;  %v541_v30 = vpop.permute.xlu0 %540  ;;  %v2133_v33 = vpack.i.bf16 %v1673_v28, %v1672_v27 }
  0x97   : > { %v549_v34 = vmul.bf16 %v541_v30, %v2107_v20  ;;  %404 = vmatpush1.bf16.msra.mxu1 %v398_v31  ;;  %v545_v45 = vsel %vm544_vm4, %v541_v30, %v543_v42  ;;  %v762_v50 = vpop.permute.xlu1 %761  ;;  %v1797_v30 = vld [vmem:[%s2449_s1 + $0x6] sm:$0x3] }
  0x98   : > { %477 = vrot.lane.b32.xlu1 %v469_v32, %s1985_s16  ;;  %v550_v47 = vmul.bf16 %v545_v45, %v2118_v24  ;;  %v770_v54 = vmul.bf16 %v762_v50, %v2121_v25 }
  0x99   : > { %557 = vrot.lane.b32.xlu0 %v549_v34, %s1986_s17  ;;  %v1800_v34 = vld [vmem:[%s2449_s1 + $0x8] sm:$0x3] }
  0x9a   : > { %v682_v36 = vpop.permute.xlu0 %681  ;;  %1793 = vmatmul.mubr.msk.bf16.vlgmr.msra.gmra.mrb[0].mxu1 %vm342_vm2, %v328_v35 }
  0x9b   : > { %607 = vmatprep.mubr.bf16.mxu1 %v1984_v21  ;;  %v690_v39 = vmul.bf16 %v682_v36, %v2107_v20  ;;  %v686_v49 = vsel %vm685_vm5, %v682_v36, %v684_v48  ;;  %v903_v57 = vpop.permute.xlu1 %902 }
  0x9c   : > { %624 = vrot.lane.b32.xlu1 %v2121_v25, %s1982_s9  ;;  %v691_v52 = vmul.bf16 %v686_v49, %v2118_v24  ;;  %v911_v60 = vmul.bf16 %v903_v57, %v2121_v25 }
  0x9d   : > { %622 = vrot.lane.b32.xlu0 %v2118_v24, %s1982_s9 }
  0x9e   : > { %v760_v38 = vpop.permute.xlu0 %759 }
  0x9f   : > { %v768_v40 = vmul.bf16 %v760_v38, %v2107_v20  ;;  %v764_v53 = vsel %vm763_vm6, %v760_v38, %v762_v50 }
  0xa0   : > { %v769_v55 = vmul.bf16 %v764_v53, %v2118_v24 }
  0xa1   : > { %698 = vrot.lane.b32.xlu0 %v690_v39, %s2456_s18  ;;  %776 = vrot.lane.b32.xlu1 %v768_v40, %s2458_s19  ;;  %v1803_v40 = vld [vmem:[%s2449_s1 + $0xa] sm:$0x3] }
  0xa2   : > { %v901_v56 = vpop.permute.xlu0 %900 }
  0xa3   : > { %v909_v58 = vmul.bf16 %v901_v56, %v2107_v20  ;;  %v905_v59 = vsel %vm904_vm7, %v901_v56, %v903_v57 }
  0xa4   : > { %v910_v61 = vmul.bf16 %v905_v59, %v2118_v24 }
  0xa5   : > { %479 = vrot.lane.b32.xlu0 %v470_v43, %s1985_s16  ;;  %481 = vrot.lane.b32.xlu1 %v471_v44, %s1985_s16 }
  0xa9   : > { %561 = vrot.lane.b32.xlu0 %v551_v46, %s1986_s17  ;;  %559 = vrot.lane.b32.xlu1 %v550_v47, %s1986_s17  ;;  %v1806_v47 = vld [vmem:[%s2449_s1 + $0xc] sm:$0x3] }
  0xad   : > { %839 = vrot.lane.b32.xlu0 %v2107_v20, %s2462_s14  ;;  %841 = vrot.lane.b32.xlu1 %v2118_v24, %s2462_s14 }
  0xb1   : > { %702 = vrot.lane.b32.xlu0 %v692_v51, %s2456_s18  ;;  %700 = vrot.lane.b32.xlu1 %v691_v52, %s2456_s18  ;;  %v1809_v52 = vld [vmem:[%s2449_s1 + $0xe] sm:$0x3] }
  0xb5   : > { %780 = vrot.lane.b32.xlu1 %v770_v54, %s2458_s19  ;;  %778 = vrot.lane.b32.xlu0 %v769_v55, %s2458_s19 }
  0xb9   : > { %843 = vrot.lane.b32.xlu0 %v2121_v25, %s2462_s14  ;;  %917 = vrot.lane.b32.xlu1 %v909_v58, %s2460_s15  ;;  %v1812_v58 = vld [vmem:[%s2449_s1 + $0x10] sm:$0x3]  ;;  %s1850_s14 = sshll.u32 %s2053_s28, 6  ;;  %s1991_s28 = smov [#allocation2]  }
  0xbd   : > { %921 = vrot.lane.b32.xlu1 %v911_v60, %s2460_s15  ;;  %919 = vrot.lane.b32.xlu0 %v910_v61, %s2460_s15 }
  0xc1   : > { %981 = vperm.xlu0 %1905, %v978_v62  }
 0x102   : > { %v621_v63 = vpop.permute.xlu1 %620  ;;  %v334_v0 = vpop.permute.xlu0 %333 }
 0x106   : > { %v336_v1 = vpop.permute.xlu1 %335  ;;  %v338_v2 = vpop.permute.xlu0 %337 }
 0x107   : > { %v341_v3 = vsel %vm339_vm8, %v336_v1, %v338_v2  ;;  %v340_v4 = vsel %vm339_vm8, %v334_v0, %v336_v1 }
 0x108   : > { %1790 = vmatprep.subr.msk.bf16.mxu0 %vm346_vm1, %v341_v3  ;;  %v348_v5 = vsel %vm346_vm1, %v340_v4, 0 }
 0x109   : > { %354 = vmatpush1.bf16.msra.mxu0 %v348_v5 }
 0x10a   : > { %v478_v8 = vpop.permute.xlu1 %477 }
 0x10b   : > { %v558_v9 = vpop.permute.xlu0 %557 }
 0x10c   : > { %1791 = vmatmul.mubr.msk.bf16.vlgmr.msra.gmra.mrb[0].mxu0 %vm342_vm2, %v1789_v6 }
 0x10d   : > { %527 = vmatprep.mubr.bf16.mxu0 %v1984_v21 }
 0x10e   : > { %v625_v10 = vpop.permute.xlu1 %624 }
 0x10f   : > { %v623_v11 = vpop.permute.xlu0 %622 }
 0x110   : > { %v627_v19 = vsel %vm626_vm10, %v621_v63, %v623_v11  ;;  %v628_v20 = vsel %vm626_vm10, %v623_v11, %v625_v10  ;;  %v1815_v63 = vld.sshfl [vmem:[%s2454_s6] sm:$0x11 pattern:$0x76325410] }
 0x111   : > { %v633_v28 = vsel %vm346_vm1, %v627_v19, 0  ;;  %v1142_v0 = vshrl.u32 %v1815_v63, 16  ;;  %v1014_v3 = vpack.i.b16 %v1815_v63, %v1815_v63 }
 0x113   : > { %v777_v12 = vpop.permute.xlu1 %776  ;;  %v699_v13 = vpop.permute.xlu0 %698  ;;  %v1143_v1 = vpack.i.b16 %v1142_v0, %v1142_v0  ;;  %v2265_v4 = vrot.slane %v1014_v3, %v2085_v7 }
 0x115   : > { %v1148_v2 = vrot.slane %v1143_v1, %v2085_v7 }
 0x117   : > { %v482_v14 = vpop.permute.xlu1 %481  ;;  %v480_v15 = vpop.permute.xlu0 %479  ;;  %1158 = vrot.lane.b32.xlu0 %v1148_v2, %s1976_s20 }
 0x118   : > { %v484_v16 = vsel %vm483_vm9, %v478_v8, %v480_v15  ;;  %v485_v17 = vsel %vm483_vm9, %v480_v15, %v482_v14 }
 0x119   : > { %v490_v18 = vsel %vm346_vm1, %v484_v16, 0  ;;  %1795 = vmatprep.subr.msk.bf16.mxu0 %vm346_vm1, %v485_v17 }
 0x11a   : > { %496 = vmatpush1.bf16.msra.mxu0 %v490_v18 }
 0x11b   : > { %v560_v23 = vpop.permute.xlu1 %559  ;;  %1801 = vmatprep.subr.msk.bf16.mxu0 %vm346_vm1, %v628_v20  ;;  %v562_v24 = vpop.permute.xlu0 %561  ;;  %1236 = vrot.lane.b32.xlu0 %v2265_v4, %s1978_s22 }
 0x11c   : > { %v564_v26 = vsel %vm563_vm11, %v558_v9, %v560_v23  ;;  %v565_v27 = vsel %vm563_vm11, %v560_v23, %v562_v24 }
 0x11d   : > { %v570_v29 = vsel %vm346_vm1, %v564_v26, 0  ;;  %1796 = vmatmul.mubr.msk.bf16.vlgmr.msra.gmra.mrb[4].mxu0 %vm342_vm2, %v1794_v22  ;;  %1798 = vmatprep.subr.msk.bf16.mxu1 %vm346_vm1, %v565_v27 }
 0x11e   : > { %576 = vmatpush1.bf16.msra.mxu1 %v570_v29  ;;  %639 = vmatpush1.bf16.msra.mxu0 %v633_v28 }
 0x11f   : > { %v842_v31 = vpop.permute.xlu1 %841  ;;  %v840_v32 = vpop.permute.xlu0 %839  ;;  %670 = vmatprep.mubr.bf16.mxu0 %v1984_v21  ;;  %1374 = vrot.lane.b32.xlu0 %v1148_v2, %s1979_s23 }
 0x120   : > { %v846_v46 = vsel %vm845_vm14, %v840_v32, %v842_v31 }
 0x121   : > { %1799 = vmatmul.mubr.msk.bf16.vlgmr.msra.gmra.mrb[4].mxu1 %vm342_vm2, %v1797_v30  ;;  %v852_v51 = vsel %vm346_vm1, %v846_v46, 0 }
 0x122   : > { %748 = vmatprep.mubr.bf16.mxu1 %v1984_v21 }
 0x123   : > { %v701_v35 = vpop.permute.xlu1 %700  ;;  %v703_v36 = vpop.permute.xlu0 %702  ;;  %1450 = vrot.lane.b32.xlu0 %v2265_v4, %s1980_s29 }
 0x124   : > { %v705_v37 = vsel %vm704_vm12, %v699_v13, %v701_v35  ;;  %v706_v38 = vsel %vm704_vm12, %v701_v35, %v703_v36 }
 0x125   : > { %v711_v39 = vsel %vm346_vm1, %v705_v37, 0  ;;  %1802 = vmatmul.mubr.msk.bf16.vlgmr.msra.gmra.mrb[8].mxu0 %vm342_vm2, %v1800_v34  ;;  %1804 = vmatprep.subr.msk.bf16.mxu1 %vm346_vm1, %v706_v38 }
 0x126   : > { %717 = vmatpush1.bf16.msra.mxu1 %v711_v39  ;;  %826 = vmatprep.mubr.bf16.mxu0 %v1984_v21 }
 0x127   : > { %v781_v41 = vpop.permute.xlu1 %780  ;;  %v779_v42 = vpop.permute.xlu0 %778  ;;  %1588 = vrot.lane.b32.xlu0 %v1148_v2, %s1981_s8 }
 0x128   : > { %v783_v43 = vsel %vm782_vm13, %v777_v12, %v779_v42  ;;  %v784_v44 = vsel %vm782_vm13, %v779_v42, %v781_v41 }
 0x129   : > { %v789_v45 = vsel %vm346_vm1, %v783_v43, 0  ;;  %1805 = vmatmul.mubr.msk.bf16.vlgmr.msra.gmra.mrb[8].mxu1 %vm342_vm2, %v1803_v40  ;;  %1807 = vmatprep.subr.msk.bf16.mxu0 %vm346_vm1, %v784_v44 }
 0x12a   : > { %795 = vmatpush1.bf16.msra.mxu0 %v789_v45  ;;  %889 = vmatprep.mubr.bf16.mxu1 %v1984_v21 }
 0x12b   : > { %v918_v48 = vpop.permute.xlu1 %917  ;;  %v844_v49 = vpop.permute.xlu0 %843 }
 0x12c   : > { %v847_v50 = vsel %vm845_vm14, %v842_v31, %v844_v49 }
 0x12d   : > { %1808 = vmatmul.mubr.msk.bf16.vlgmr.msra.gmra.mrb[12].mxu0 %vm342_vm2, %v1806_v47  ;;  %1810 = vmatprep.subr.msk.bf16.mxu1 %vm346_vm1, %v847_v50 }
 0x12e   : > { %858 = vmatpush1.bf16.msra.mxu1 %v852_v51  ;;  %967 = vmatprep.mubr.bf16.mxu0 %v1984_v21 }
 0x12f   : > { %v922_v53 = vpop.permute.xlu1 %921  ;;  %v920_v54 = vpop.permute.xlu0 %919 }
 0x130   : > { %v924_v55 = vsel %vm923_vm15, %v918_v48, %v920_v54  ;;  %v925_v56 = vsel %vm923_vm15, %v920_v54, %v922_v53 }
 0x131   : > { %v930_v57 = vsel %vm346_vm1, %v924_v55, 0  ;;  %1811 = vmatmul.mubr.msk.bf16.vlgmr.msra.gmra.mrb[12].mxu1 %vm342_vm2, %v1809_v52  ;;  %1813 = vmatprep.subr.msk.bf16.mxu0 %vm346_vm1, %v925_v56  ;;  %v1012_v55 = vcombine.high %v1815_v63, %v1815_v63 }
 0x132   : > { %936 = vmatpush1.bf16.msra.mxu0 %v930_v57  ;;  %1083 = vmatprep.mubr.bf16.mxu1 %v1984_v21 }
 0x135   : > { %1814 = vmatmul.mubr.msk.bf16.vlgmr.msra.gmra.mrb[16].mxu0 %vm342_vm2, %v1812_v58 }
 0x136   : > { %1133 = vmatprep.mubr.bf16.mxu0 %v1984_v21 }
 0x140   : > { %v982_v52 = vpop.permute.xlu0 %981 }
 0x16d   : > { %v437_v59 = vpop.f32.mrb[0].mxu1 }
 0x16e   : > { %v439_v60 = vpop.f32.mrb[1].mxu1 }
 0x16f   : > { %v441_v61 = vpop.f32.mrb[2].mxu1 }
 0x170   : > { %v442_v62 = vpop.f32.mrb[3].mxu1 }
 0x171   : > { %v1149_v62 = vshrl.u32 %v1012_v55, 16 }
 0x173   : > { %v1150_v2 = vpack.i.b16 %v1149_v62, %v1149_v62 }
 0x1df   : > { %v387_v5 = vpop.f32.mrb[0].mxu0 }
 0x1e0   : > { %v389_v6 = vpop.f32.mrb[1].mxu0  ;;  %v438_v8 = vadd.f32 %v437_v59, %v387_v5  ;;  %v1155_v5 = vrot.slane %v1150_v2, %v2085_v7 }
 0x1e1   : > { %v391_v9 = vpop.f32.mrb[2].mxu0  ;;  %v440_v10 = vadd.f32 %v439_v60, %v389_v6  ;;  %v1021_v6 = vpack.i.b16 %v1012_v55, %v1012_v55 }
 0x1e2   : > { %v392_v11 = vpop.f32.mrb[3].mxu0 }
 0x1e3   : > { %v1026_v63 = vrot.slane %v1021_v6, %v2085_v7 }
 0x1f0   : > { %v529_v12 = vpop.f32.mrb[4].mxu0 }
 0x1f1   : > { %v536_v13 = vadd.f32 %v529_v12, %v438_v8  ;;  %v531_v14 = vpop.f32.mrb[5].mxu0  ;;  %v1159_v8 = vpop.permute.xlu0 %1158 }
 0x1f2   : > { %v537_v15 = vadd.f32 %v531_v14, %v440_v10  ;;  %v533_v16 = vpop.f32.mrb[6].mxu0 }
 0x1f3   : > { %v534_v17 = vpop.f32.mrb[7].mxu0 }
 0x1f4   : > { %v609_v18 = vpop.f32.mrb[4].mxu1 }
 0x1f5   : > { %v616_v19 = vadd.f32 %v609_v18, %v536_v13  ;;  %v611_v20 = vpop.f32.mrb[5].mxu1  ;;  %v1237_v11 = vpop.permute.xlu0 %1236  ;;  %v1029_v18 = vld [vmem:[%s2451_s3] sm:$0x3] }
 0x1f6   : > { %v617_v22 = vadd.f32 %v611_v20, %v537_v15  ;;  %v613_v23 = vpop.f32.mrb[6].mxu1 }
 0x1f7   : > { %v614_v24 = vpop.f32.mrb[7].mxu1 }
 0x1f8   : > { %v672_v26 = vpop.f32.mrb[8].mxu0 }
 0x1f9   : > { %v679_v27 = vadd.f32 %v672_v26, %v616_v19  ;;  %v674_v28 = vpop.f32.mrb[9].mxu0  ;;  %v1375_v17 = vpop.permute.xlu0 %1374 }
 0x1fa   : > { %v680_v29 = vadd.f32 %v674_v28, %v617_v22  ;;  %v676_v30 = vpop.f32.mrb[10].mxu0 }
 0x1fb   : > { %v677_v31 = vpop.f32.mrb[11].mxu0 }
 0x1fc   : > { %v750_v32 = vpop.f32.mrb[8].mxu1 }
 0x1fd   : > { %v757_v34 = vadd.f32 %v750_v32, %v679_v27  ;;  %v752_v35 = vpop.f32.mrb[9].mxu1  ;;  %v1451_v22 = vpop.permute.xlu0 %1450 }
 0x1fe   : > { %v758_v36 = vadd.f32 %v752_v35, %v680_v29  ;;  %v754_v37 = vpop.f32.mrb[10].mxu1 }
 0x1ff   : > { %v755_v38 = vpop.f32.mrb[11].mxu1 }
 0x200   : > { %v828_v39 = vpop.f32.mrb[12].mxu0 }
 0x201   : > { %v835_v40 = vadd.f32 %v828_v39, %v757_v34  ;;  %v830_v41 = vpop.f32.mrb[13].mxu0 }
 0x202   : > { %v836_v42 = vadd.f32 %v830_v41, %v758_v36  ;;  %v832_v43 = vpop.f32.mrb[14].mxu0 }
 0x203   : > { %v833_v44 = vpop.f32.mrb[15].mxu0 }
 0x204   : > { %v891_v45 = vpop.f32.mrb[12].mxu1 }
 0x205   : > { %v898_v46 = vadd.f32 %v891_v45, %v835_v40  ;;  %v893_v47 = vpop.f32.mrb[13].mxu1 }
 0x206   : > { %v899_v48 = vadd.f32 %v893_v47, %v836_v42  ;;  %v895_v49 = vpop.f32.mrb[14].mxu1  ;;  %v1589_v42 = vpop.permute.xlu0 %1588 }
 0x207   : > { %v896_v50 = vpop.f32.mrb[15].mxu1  ;;  %v1674_v49 = vunpack.c.l.bf16 %v2121_v25 }
 0x208   : > { %v969_v51 = vpop.f32.mrb[16].mxu0 }
 0x209   : > { %v976_v53 = vadd.f32 %v969_v51, %v898_v46  ;;  %v971_v54 = vpop.f32.mrb[17].mxu0 }
 0x20a   : > { %v977_v56 = vadd.f32 %v971_v54, %v899_v48  ;;  %v973_v57 = vpop.f32.mrb[18].mxu0  ;;  %v1664_v48 = vld [vmem:[%s2452_s4] sm:$0xf] }
 0x20b   : > { %v984_v58 = vadd.f32 %v982_v52, %v976_v53  ;;  %v974_v59 = vpop.f32.mrb[19].mxu0 }
 0x20c   : > { %v985_v60 = vadd.f32 %v982_v52, %v977_v56 }
 0x20d   : > { %v986_v61 = vmax.f32 %v984_v58, 0.0 }
 0x20e   : > { %v987_v0 = vmax.f32 %v985_v60, 0.0 }
 0x20f   : > { %v988_v1 = vpack.c.bf16 %v986_v61, %v986_v61 }
 0x210   : > { %v989_v3 = vpack.c.bf16 %v987_v0, %v987_v0 }
 0x211   : > { %992 = vrot.lane.b32.xlu1 %v988_v1, %s1977_s21 }
 0x215   : > { %994 = vrot.lane.b32.xlu1 %v989_v3, %s1977_s21 }
 0x219   : > { %1160 = vrot.lane.b32.xlu1 %v1155_v5, %s1976_s20 }
 0x21d   : > { %1238 = vrot.lane.b32.xlu1 %v1026_v63, %s1978_s22  ;;  %s2466_s22 = smov 110  }
 0x221   : > { %1376 = vrot.lane.b32.xlu1 %v1155_v5, %s1979_s23  ;;  %s2467_s23 = smov 96  }
 0x225   : > { %1452 = vrot.lane.b32.xlu1 %v1026_v63, %s1980_s29  ;;  %s2468_s29 = smov 95  }
 0x229   : > { %1590 = vrot.lane.b32.xlu1 %v1155_v5, %s1981_s8  ;;  %s2469_s8 = smov 94  }
 0x283   : > { %v993_v9 = vpop.permute.xlu1 %992 }
 0x284   : > { %v999_v10 = vsel %vm292_vm0, 0, %v993_v9 }
 0x285   : > { %1314 = vrot.lane.b32.xlu1 %v999_v10, %s1982_s9  ;;  %1034 = vrot.lane.b32.xlu0 %v999_v10, %s1983_s13  ;;  %v1027_v7 = vmul.bf16 %v2265_v4, %v999_v10  ;;  %v1166_v19 = vmul.bf16 %v1159_v8, %v999_v10  ;;  %v1244_v20 = vmul.bf16 %v1237_v11, %v999_v10 }
 0x286   : > { %v1382_v23 = vmul.bf16 %v1375_v17, %v999_v10  ;;  %v1458_v24 = vmul.bf16 %v1451_v22, %v999_v10  ;;  %v1596_v44 = vmul.bf16 %v1589_v42, %v999_v10 }
 0x287   : > { %v995_v12 = vpop.permute.xlu1 %994  ;;  %v1096_v16 = vsel %vm346_vm1, %v1027_v7, 0 }
 0x288   : > { %v996_v13 = vsel %vm292_vm0, %v993_v9, %v995_v12  ;;  %v1002_v14 = vsel %vm292_vm0, %v995_v12, 0 }
 0x289   : > { %1038 = vrot.lane.b32.xlu0 %v1002_v14, %s1983_s13  ;;  %1036 = vrot.lane.b32.xlu1 %v996_v13, %s1983_s13  ;;  %v1028_v15 = vmul.bf16 %v1026_v63, %v996_v13  ;;  %v1821_v63 = vld [vmem:[%s2451_s3 + $0x4] sm:$0x3]  ;;  %s1916_s13 = sshll.u32 %s1991_s28, 4  ;;  %s1917_s13 = int_to_ptr.vmem [resolvable:$false] %s1916_s13 }
 0x28b   : > { %1819 = vmatprep.subr.msk.bf16.mxu0 %vm346_vm1, %v1028_v15  ;;  %v1161_v4 = vpop.permute.xlu1 %1160 }
 0x28c   : > { %1102 = vmatpush1.bf16.msra.mxu0 %v1096_v16  ;;  %v1162_v26 = vsel %vm464_vm3, %v1159_v8, %v1161_v4  ;;  %v1168_v29 = vmul.bf16 %v1161_v4, %v1002_v14  ;;  %v1827_v16 = vld [vmem:[%s2451_s3 + $0x8] sm:$0x3] }
 0x28d   : > { %1316 = vrot.lane.b32.xlu0 %v996_v13, %s1982_s9  ;;  %1318 = vrot.lane.b32.xlu1 %v1002_v14, %s1982_s9  ;;  %v1167_v28 = vmul.bf16 %v1162_v26, %v996_v13 }
 0x28f   : > { %1820 = vmatmul.mubr.msk.bf16.vlgmr.msra.gmra.mrb[20].mxu0 %vm342_vm2, %v1029_v18  ;;  %v1239_v27 = vpop.permute.xlu1 %1238 }
 0x290   : > { %1301 = vmatprep.mubr.bf16.mxu0 %v1984_v21  ;;  %v1240_v30 = vsel %vm544_vm4, %v1237_v11, %v1239_v27  ;;  %v1246_v32 = vmul.bf16 %v1239_v27, %v1002_v14 }
 0x291   : > { %1174 = vrot.lane.b32.xlu1 %v1166_v19, %s1985_s16  ;;  %1252 = vrot.lane.b32.xlu0 %v1244_v20, %s1986_s17  ;;  %v1245_v31 = vmul.bf16 %v1240_v30, %v996_v13  ;;  %v1833_v30 = vld [vmem:[%s2451_s3 + $0xc] sm:$0x3] }
 0x293   : > { %v1377_v34 = vpop.permute.xlu1 %1376 }
 0x294   : > { %v1378_v35 = vsel %vm685_vm5, %v1375_v17, %v1377_v34  ;;  %v1384_v38 = vmul.bf16 %v1377_v34, %v1002_v14 }
 0x295   : > { %1390 = vrot.lane.b32.xlu0 %v1382_v23, %s2466_s22  ;;  %1466 = vrot.lane.b32.xlu1 %v1458_v24, %s2467_s23  ;;  %v1383_v37 = vmul.bf16 %v1378_v35, %v996_v13 }
 0x297   : > { %v1453_v36 = vpop.permute.xlu1 %1452 }
 0x298   : > { %v1454_v39 = vsel %vm763_vm6, %v1451_v22, %v1453_v36  ;;  %v1460_v41 = vmul.bf16 %v1453_v36, %v1002_v14  ;;  %v1830_v22 = vld [vmem:[%s2451_s3 + $0xa] sm:$0x3]  ;;  %v1836_v36 = vld [vmem:[%s2451_s3 + $0xe] sm:$0x3] }
 0x299   : > { %1176 = vrot.lane.b32.xlu0 %v1167_v28, %s1985_s16  ;;  %1178 = vrot.lane.b32.xlu1 %v1168_v29, %s1985_s16  ;;  %v1459_v40 = vmul.bf16 %v1454_v39, %v996_v13  ;;  %s1918_s16 = scalar_lea.vmem %s1917_s13, 128 }
 0x29b   : > { %v1591_v43 = vpop.permute.xlu1 %1590 }
 0x29c   : > { %v1592_v45 = vsel %vm904_vm7, %v1589_v42, %v1591_v43  ;;  %v1598_v47 = vmul.bf16 %v1591_v43, %v1002_v14  ;;  %v1839_v42 = vld [vmem:[%s2451_s3 + $0x10] sm:$0x3] }
 0x29d   : > { %1256 = vrot.lane.b32.xlu0 %v1246_v32, %s1986_s17  ;;  %1254 = vrot.lane.b32.xlu1 %v1245_v31, %s1986_s17  ;;  %v1597_v46 = vmul.bf16 %v1592_v45, %v996_v13 }
 0x2a1   : > { %1528 = vrot.lane.b32.xlu0 %v999_v10, %s2468_s29  ;;  %1530 = vrot.lane.b32.xlu1 %v996_v13, %s2468_s29  ;;  %v1824_v13 = vld [vmem:[%s2451_s3 + $0x6] sm:$0x3] }
 0x2a5   : > { %1394 = vrot.lane.b32.xlu0 %v1384_v38, %s2466_s22  ;;  %1392 = vrot.lane.b32.xlu1 %v1383_v37, %s2466_s22 }
 0x2a9   : > { %1470 = vrot.lane.b32.xlu1 %v1460_v41, %s2467_s23  ;;  %1468 = vrot.lane.b32.xlu0 %v1459_v40, %s2467_s23  ;;  %s2406_s23 = scalar_lea.hbm %s2455_s7, %s1850_s14 }
 0x2ad   : > { %1532 = vrot.lane.b32.xlu0 %v1002_v14, %s2468_s29  ;;  %1604 = vrot.lane.b32.xlu1 %v1596_v44, %s2469_s8 }
 0x2b1   : > { %1608 = vrot.lane.b32.xlu1 %v1598_v47, %s2469_s8  ;;  %1606 = vrot.lane.b32.xlu0 %v1597_v46, %s2469_s8 }
 0x2b5   : > { %1907 = vrot.lane.b32.xlu1 %v2133_v33, %s1982_s9  ;;  %1667 = vperm.xlu0 %1905, %v1664_v48   ;;  %v1816_v33 = vld [vmem:[%s2451_s3 + $0x2] sm:$0x3] }
 0x2b9   : > { %1682 = vrot.lane.b32.xlu0 %v1674_v49, %s1982_s9  ;;  %s269_s9 = sand.u32 1, %s1966_s25  }
 0x2ba   : > { %s1785_s19 = sshll.u32 %s269_s9, 2  ;;  %s1708_s29 = scalar_lea.sflag [#allocation3], %s269_s9 }
 0x2bb   : > { %s271_s15 = scalar_lea.vmem [#allocation2], %s1785_s19 }
 0x2bc   : > { %s1722_s20 = sshll.u32 %s271_s15, 4  ;;  %s2408_s20 = int_to_ptr.vmem [resolvable:$true] %s1722_s20 }
 0x2bd   : > { %s1912_s8 = scalar_lea.vmem %s2408_s20, 64  ;;  %p1919_p0 = scmp.lt.s32.totalorder %s2408_s20, %s1917_s13 }
 0x2be   : > { %p1913_p11 = scmp.ne.s32.totalorder %s2408_s20, %s1912_s8  ;;  %p1920_p1 = scmp.lt.s32.totalorder %s1918_s16, %s1912_s8 }
 0x2c0   : > { %p1914_p12 = pnand %p1913_p11, %p2070_p5  ;;  %p1921_p2 = por %p1920_p1, %p1919_p0 }
 0x2c2   : > { %p1915_p13 = pneg %p1914_p12 }
 0x2c4   : > { %p1922_p3 = pnand %p1921_p2, %p1915_p13 }
 0x2f7   : > { %v1315_v50 = vpop.permute.xlu1 %1314  ;;  %v1035_v51 = vpop.permute.xlu0 %1034 }
 0x2fb   : > { %v1037_v52 = vpop.permute.xlu1 %1036  ;;  %v1039_v53 = vpop.permute.xlu0 %1038 }
 0x2fc   : > { %v1040_v54 = vsel %vm339_vm8, %v1035_v51, %v1037_v52  ;;  %v1041_v55 = vsel %vm339_vm8, %v1037_v52, %v1039_v53 }
 0x2fd   : > { %v1046_v56 = vsel %vm346_vm1, %v1040_v54, 0  ;;  %1817 = vmatprep.subr.msk.bf16.mxu1 %vm346_vm1, %v1041_v55 }
 0x2fe   : > { %1052 = vmatpush1.bf16.msra.mxu1 %v1046_v56 }
 0x2ff   : > { %v1319_v25 = vpop.permute.xlu1 %1318  ;;  %v1317_v57 = vpop.permute.xlu0 %1316 }
 0x300   : > { %v1320_v5 = vsel %vm626_vm10, %v1315_v50, %v1317_v57  ;;  %v1321_v6 = vsel %vm626_vm10, %v1317_v57, %v1319_v25 }
 0x301   : > { %1818 = vmatmul.mubr.msk.bf16.vlgmr.msra.gmra.mrb[16].mxu1 %vm342_vm2, %v1816_v33  ;;  %v1326_v12 = vsel %vm346_vm1, %v1320_v5, 0 }
 0x302   : > { %1223 = vmatprep.mubr.bf16.mxu1 %v1984_v21 }
 0x303   : > { %v1175_v58 = vpop.permute.xlu1 %1174  ;;  %v1253_v59 = vpop.permute.xlu0 %1252 }
 0x307   : > { %v1467_v60 = vpop.permute.xlu1 %1466  ;;  %v1391_v61 = vpop.permute.xlu0 %1390 }
 0x30b   : > { %v1179_v62 = vpop.permute.xlu1 %1178  ;;  %v1177_v0 = vpop.permute.xlu0 %1176 }
 0x30c   : > { %v1180_v1 = vsel %vm483_vm9, %v1175_v58, %v1177_v0  ;;  %v1181_v2 = vsel %vm483_vm9, %v1177_v0, %v1179_v62 }
 0x30d   : > { %v1186_v3 = vsel %vm346_vm1, %v1180_v1, 0  ;;  %1822 = vmatprep.subr.msk.bf16.mxu1 %vm346_vm1, %v1181_v2 }
 0x30e   : > { %1192 = vmatpush1.bf16.msra.mxu1 %v1186_v3 }
 0x30f   : > { %v1255_v8 = vpop.permute.xlu1 %1254  ;;  %1828 = vmatprep.subr.msk.bf16.mxu1 %vm346_vm1, %v1321_v6  ;;  %v1257_v9 = vpop.permute.xlu0 %1256 }
 0x310   : > { %v1258_v10 = vsel %vm563_vm11, %v1253_v59, %v1255_v8  ;;  %v1259_v11 = vsel %vm563_vm11, %v1255_v8, %v1257_v9 }
 0x311   : > { %v1264_v7 = vsel %vm346_vm1, %v1258_v10, 0  ;;  %1823 = vmatmul.mubr.msk.bf16.vlgmr.msra.gmra.mrb[20].mxu1 %vm342_vm2, %v1821_v63  ;;  %1825 = vmatprep.subr.msk.bf16.mxu0 %vm346_vm1, %v1259_v11 }
 0x312   : > { %1270 = vmatpush1.bf16.msra.mxu0 %v1264_v7  ;;  %1332 = vmatpush1.bf16.msra.mxu1 %v1326_v12 }
 0x313   : > { %v1531_v14 = vpop.permute.xlu1 %1530  ;;  %v1529_v15 = vpop.permute.xlu0 %1528  ;;  %1363 = vmatprep.mubr.bf16.mxu1 %v1984_v21 }
 0x314   : > { %v1534_v29 = vsel %vm845_vm14, %v1529_v15, %v1531_v14 }
 0x315   : > { %1826 = vmatmul.mubr.msk.bf16.vlgmr.msra.gmra.mrb[24].mxu0 %vm342_vm2, %v1824_v13  ;;  %v1540_v35 = vsel %vm346_vm1, %v1534_v29, 0 }
 0x316   : > { %1439 = vmatprep.mubr.bf16.mxu0 %v1984_v21 }
 0x317   : > { %v1393_v17 = vpop.permute.xlu1 %1392  ;;  %v1395_v18 = vpop.permute.xlu0 %1394 }
 0x318   : > { %v1396_v4 = vsel %vm704_vm12, %v1391_v61, %v1393_v17  ;;  %v1397_v19 = vsel %vm704_vm12, %v1393_v17, %v1395_v18 }
 0x319   : > { %v1402_v20 = vsel %vm346_vm1, %v1396_v4, 0  ;;  %1829 = vmatmul.mubr.msk.bf16.vlgmr.msra.gmra.mrb[24].mxu1 %vm342_vm2, %v1827_v16  ;;  %1831 = vmatprep.subr.msk.bf16.mxu0 %vm346_vm1, %v1397_v19 }
 0x31a   : > { %1408 = vmatpush1.bf16.msra.mxu0 %v1402_v20  ;;  %1515 = vmatprep.mubr.bf16.mxu1 %v1984_v21 }
 0x31b   : > { %v1471_v23 = vpop.permute.xlu1 %1470  ;;  %v1469_v24 = vpop.permute.xlu0 %1468 }
 0x31c   : > { %v1472_v26 = vsel %vm782_vm13, %v1467_v60, %v1469_v24  ;;  %v1473_v27 = vsel %vm782_vm13, %v1469_v24, %v1471_v23 }
 0x31d   : > { %v1478_v28 = vsel %vm346_vm1, %v1472_v26, 0  ;;  %1832 = vmatmul.mubr.msk.bf16.vlgmr.msra.gmra.mrb[28].mxu0 %vm342_vm2, %v1830_v22  ;;  %1834 = vmatprep.subr.msk.bf16.mxu1 %vm346_vm1, %v1473_v27 }
 0x31e   : > { %1484 = vmatpush1.bf16.msra.mxu1 %v1478_v28  ;;  %1577 = vmatprep.mubr.bf16.mxu0 %v1984_v21 }
 0x31f   : > { %v1605_v31 = vpop.permute.xlu1 %1604  ;;  %v1533_v32 = vpop.permute.xlu0 %1532 }
 0x320   : > { %v1535_v34 = vsel %vm845_vm14, %v1531_v14, %v1533_v32 }
 0x321   : > { %1835 = vmatmul.mubr.msk.bf16.vlgmr.msra.gmra.mrb[28].mxu1 %vm342_vm2, %v1833_v30  ;;  %1837 = vmatprep.subr.msk.bf16.mxu0 %vm346_vm1, %v1535_v34 }
 0x322   : > { %1546 = vmatpush1.bf16.msra.mxu0 %v1540_v35  ;;  %1653 = vmatprep.mubr.bf16.mxu1 %v1984_v21 }
 0x323   : > { %v1609_v37 = vpop.permute.xlu1 %1608  ;;  %v1607_v38 = vpop.permute.xlu0 %1606 }
 0x324   : > { %v1610_v39 = vsel %vm923_vm15, %v1605_v31, %v1607_v38  ;;  %v1611_v40 = vsel %vm923_vm15, %v1607_v38, %v1609_v37 }
 0x325   : > { %v1616_v41 = vsel %vm346_vm1, %v1610_v39, 0  ;;  %1838 = vmatmul.mubr.msk.bf16.vlgmr.msra.gmra.mrb[32].mxu0 %vm342_vm2, %v1836_v36  ;;  %1840 = vmatprep.subr.msk.bf16.mxu1 %vm346_vm1, %v1611_v40 }
 0x326   : > { %1622 = vmatpush1.bf16.msra.mxu1 %v1616_v41 }
 0x327   : > { %v1908_v4 = vpop.permute.xlu1 %1907 }
 0x328   : > { %v1910_v26 = vunpack.i.h.bf16 %v1908_v4  ;;  %v1909_v27 = vunpack.i.l.bf16 %v1908_v4 }
 0x329   : > { %1841 = vmatmul.mubr.msk.bf16.vlgmr.msra.gmra.mrb[32].mxu1 %vm342_vm2, %v1839_v42 }
 0x32a   : > { %v1685_v37 = vsel %vm626_vm10, %v1909_v27, %v1910_v26 }
 0x334   : > { %v1668_v17 = vpop.permute.xlu0 %1667 }
 0x338   : > { %v1683_v31 = vpop.permute.xlu0 %1682 }
 0x339   : > { %v1686_v39 = vsel %vm626_vm10, %v1910_v26, %v1683_v31 }
 0x362   : > { %v1135_v21 = vpop.f32.mrb[20].mxu0 }
 0x363   : > { %v1137_v43 = vpop.f32.mrb[21].mxu0 }
 0x364   : > { %v1139_v44 = vpop.f32.mrb[22].mxu0 }
 0x365   : > { %v1140_v45 = vpop.f32.mrb[23].mxu0 }
 0x3d4   : > { %v1085_v46 = vpop.f32.mrb[16].mxu1 }
 0x3d5   : > { %v1087_v47 = vpop.f32.mrb[17].mxu1  ;;  %v1136_v48 = vadd.f32 %v1135_v21, %v1085_v46 }
 0x3d6   : > { %v1089_v49 = vpop.f32.mrb[18].mxu1  ;;  %v1138_v50 = vadd.f32 %v1137_v43, %v1087_v47 }
 0x3d7   : > { %v1090_v51 = vpop.f32.mrb[19].mxu1 }
 0x3e4   : > { %v1225_v52 = vpop.f32.mrb[20].mxu1 }
 0x3e5   : > { %v1232_v53 = vadd.f32 %v1225_v52, %v1136_v48  ;;  %v1227_v54 = vpop.f32.mrb[21].mxu1 }
 0x3e6   : > { %v1233_v55 = vadd.f32 %v1227_v54, %v1138_v50  ;;  %v1229_v56 = vpop.f32.mrb[22].mxu1 }
 0x3e7   : > { %v1230_v33 = vpop.f32.mrb[23].mxu1 }
 0x3e8   : > { %v1303_v25 = vpop.f32.mrb[24].mxu0 }
 0x3e9   : > { %v1310_v57 = vadd.f32 %v1303_v25, %v1232_v53  ;;  %v1305_v58 = vpop.f32.mrb[25].mxu0 }
 0x3ea   : > { %v1311_v59 = vadd.f32 %v1305_v58, %v1233_v55  ;;  %v1307_v60 = vpop.f32.mrb[26].mxu0 }
 0x3eb   : > { %v1308_v61 = vpop.f32.mrb[27].mxu0 }
 0x3ec   : > { %v1365_v62 = vpop.f32.mrb[24].mxu1 }
 0x3ed   : > { %v1372_v0 = vadd.f32 %v1365_v62, %v1310_v57  ;;  %v1367_v1 = vpop.f32.mrb[25].mxu1 }
 0x3ee   : > { %v1373_v2 = vadd.f32 %v1367_v1, %v1311_v59  ;;  %v1369_v3 = vpop.f32.mrb[26].mxu1 }
 0x3ef   : > { %v1370_v5 = vpop.f32.mrb[27].mxu1 }
 0x3f0   : > { %v1441_v6 = vpop.f32.mrb[28].mxu0 }
 0x3f1   : > { %v1448_v63 = vadd.f32 %v1441_v6, %v1372_v0  ;;  %v1443_v8 = vpop.f32.mrb[29].mxu0 }
 0x3f2   : > { %v1449_v9 = vadd.f32 %v1443_v8, %v1373_v2  ;;  %v1445_v10 = vpop.f32.mrb[30].mxu0 }
 0x3f3   : > { %v1446_v11 = vpop.f32.mrb[31].mxu0 }
 0x3f4   : > { %v1517_v12 = vpop.f32.mrb[28].mxu1 }
 0x3f5   : > { %v1524_v7 = vadd.f32 %v1517_v12, %v1448_v63  ;;  %v1519_v13 = vpop.f32.mrb[29].mxu1 }
 0x3f6   : > { %v1525_v14 = vadd.f32 %v1519_v13, %v1449_v9  ;;  %v1521_v15 = vpop.f32.mrb[30].mxu1 }
 0x3f7   : > { %v1522_v16 = vpop.f32.mrb[31].mxu1 }
 0x3f8   : > { %v1579_v18 = vpop.f32.mrb[32].mxu0 }
 0x3f9   : > { %v1586_v19 = vadd.f32 %v1579_v18, %v1524_v7  ;;  %v1581_v20 = vpop.f32.mrb[33].mxu0 }
 0x3fa   : > { %v1587_v22 = vadd.f32 %v1581_v20, %v1525_v14  ;;  %v1583_v23 = vpop.f32.mrb[34].mxu0 }
 0x3fb   : > { %v1584_v24 = vpop.f32.mrb[35].mxu0 }
 0x3fc   : > { %v1655_v28 = vpop.f32.mrb[32].mxu1 }
 0x3fd   : > { %v1662_v29 = vadd.f32 %v1655_v28, %v1586_v19  ;;  %v1657_v30 = vpop.f32.mrb[33].mxu1 }
 0x3fe   : > { %v1663_v32 = vadd.f32 %v1657_v30, %v1587_v22  ;;  %v1659_v34 = vpop.f32.mrb[34].mxu1 }
 0x3ff   : > { %v1670_v35 = vadd.f32 %v1668_v17, %v1662_v29  ;;  %v1660_v36 = vpop.f32.mrb[35].mxu1 }
 0x400   : > { %v1671_v38 = vadd.f32 %v1668_v17, %v1663_v32 }
 0x401   : > { %v1689_v40 = vadd.f32 %v1685_v37, %v1670_v35 }
 0x402   : > { %v1690_v41 = vadd.f32 %v1686_v39, %v1671_v38 }
 0x403   : > { %v1691_v42 = vmax.f32 %v1689_v40, 0.0 }
 0x404   : > { %v1692_v21 = vmax.f32 %v1690_v41, 0.0 }
 0x406   : > { %v1842_v43 = vpack.c.bf16 %v1692_v21, %v1691_v42 }
 0x408   : > { %1843 = vst.sshfl [vmem:[%s271_s15] sm:$0x33 pattern:$0x76325410] %v1842_v43 }
 0x409   : > { %1925 = shalt.err (!%p1922_p3)
}
 0x40a   : > { %s1926_s17 = scalar_lea.hbm %s2406_s23, 64  ;;  %s1930_s19 = scalar_lea.hbm %s2455_s7, 128 }
 0x40b   : > { %p1927_p4 = scmp.ne.s32.totalorder %s2406_s23, %s1926_s17  ;;  %p1931_p9 = scmp.lt.u32.totalorder %s2406_s23, %s2455_s7 }
 0x40c   : > { %p1932_p10 = scmp.lt.u32.totalorder %s1930_s19, %s1926_s17  ;;  %p1934_p12 = scmp.lt.u32.totalorder %s1926_s17, %s2406_s23 }
 0x40d   : > { %p1928_p7 = pnand %p1927_p4, %p2070_p5 }
 0x40e   : > { %p1933_p11 = por %p1932_p10, %p1931_p9 }
 0x40f   : > { %p1929_p8 = pneg %p1928_p7 }
 0x410   : > { %p1935_p13 = por %p1934_p12, %p1933_p11 }
 0x412   : > { %p1936_p0 = pnand %p1935_p13, %p1929_p8 }
 0x414   : > { %1939 = shalt.err (!%p1936_p0)
}
 0x415   : > { %1851 = dma.vmem_to_hbm [thread:$0]  (%p2070_p5), %s2408_s20, 64, %s2406_s23, %s1708_s29  }
 0x416 PF: > { %p1857_p1 = scmp.ge.s32.totalorder %s1974_s27, 2  ;;  %s1734_s21 = sand.u32 1, %s1962_s24  }
 0x417   : > { %s1735_s22 = scalar_lea.sflag [#allocation3], %s1734_s21 }
 0x418   : > { %p1854_p2 = pnand %p1857_p1, %p2074_p6 }
 0x41a   : > { %1957 = dma.done.wait (!%p1854_p2), %s1735_s22, 64  }
 0x41b   : > { %1959 = vsyncadd (!%p1854_p2), %s1735_s22, 4294967232  ;;  %p17_p3 = scmp.ge.s32.totalorder %s2057_s30, 4   ;;  %s2470_s24 = smov %s1966_s25 }
 0x41c   : > { %s2471_s25 = smov %s1970_s26  ;;  %s2472_s26 = smov %s2068_s10 }
 0x41d   : > { %s2473_s27 = smov %s2057_s30  ;;  %19 = sbr.rel (!%p17_p3) target bundleno = 3 (0x3), region = 99 }
 0x424   :  { %1740 = vsyncpa [#allocation3], 1 }
 0x425   :  { %1742 = vsyncpa [#allocation3 + $0x1], 1 }

</bundles_post_ra>
